<compile_context>
chip_gen: v7x
topology: tpu7x:2x2x1
jax: 0.10.0
libtpu: 0.0.40
codegen_flags: <defaults>
</compile_context>

<pallas_src>
import functools
import numpy as np

import jax
import jax.numpy as jnp
from jax import lax
from jax.experimental import pallas as pl
from jax.experimental.pallas import tpu as pltpu

# ----------------------------- scaled-down config ---------------------------
DIM = 32            # d_model   (original: 512)
SEQ = DIM           # seq length must equal DIM (see note above)
BATCH = 2
NUM_LAYERS = 2
NUM_HEADS = 4
D_KV = 8            # per-head dim, NUM_HEADS * D_KV == DIM
INNER = NUM_HEADS * D_KV
D_FF = 64
VOCAB = 32128       # keep T5 vocab so MASK_ID is a valid token id
MASK_ID = 32099
NUM_BUCKETS = 32
MAX_DISTANCE = 128
EPS = 1e-6

# Small compatibility shims (keep the script runnable across jax versions).
_CompilerParams = getattr(pltpu, "CompilerParams", None) or getattr(
    pltpu, "TPUCompilerParams", None)


def _approx_recip(x):
    if hasattr(pl, "reciprocal"):
        return pl.reciprocal(x, approx=True)
    return 1.0 / x


# --------------------------- in-kernel matmul helpers ------------------------
def _bf16_dot(a, b):
    """a @ b with bf16 MXU inputs, f32 accumulation."""
    return jnp.dot(a.astype(jnp.bfloat16), b.astype(jnp.bfloat16),
                   preferred_element_type=jnp.float32)


def _bf16_dot_t(a, b):
    """a @ b.T with bf16 MXU inputs, f32 accumulation."""
    return lax.dot_general(a.astype(jnp.bfloat16), b.astype(jnp.bfloat16),
                           (((1,), (1,)), ((), ())),
                           preferred_element_type=jnp.float32)


# ------------------- fused encoder + QA-head Pallas kernel -------------------
def _encoder_head_kernel(x_ref, bias_ref, ln1_ref, ln2_ref, wqkv_ref, wo_ref,
                         wi_ref, woff_ref, lnf_ref, se_ref, o_ref):
    # One grid step == one batch element; everything stays in VMEM/vregs.
    x = x_ref[...]                                    # (SEQ, DIM) f32

    def rmsnorm(h, w):                                # h (SEQ, DIM), w (1, DIM)
        var = jnp.mean(h * h, axis=-1, keepdims=True)
        return h * lax.rsqrt(var + EPS) * w

    for li in range(NUM_LAYERS):
        # ----------------- self-attention block (eval-mode) ------------------
        h = rmsnorm(x, ln1_ref[pl.ds(li, 1), :])
        qkv = _bf16_dot(h, wqkv_ref[li])              # (SEQ, 3*INNER) f32
        ctx_heads = []
        for hd in range(NUM_HEADS):
            qh = qkv[:, hd * D_KV:(hd + 1) * D_KV]
            kh = qkv[:, INNER + hd * D_KV:INNER + (hd + 1) * D_KV]
            vh = qkv[:, 2 * INNER + hd * D_KV:2 * INNER + (hd + 1) * D_KV]
            # T5: no 1/sqrt(d) scaling; relative-position bias added pre-softmax
            s = _bf16_dot_t(qh, kh) + bias_ref[hd]    # (SEQ, SEQ)
            m = jnp.max(s, axis=-1, keepdims=True)
            p = jnp.exp(s - m)
            p = p * _approx_recip(jnp.sum(p, axis=-1, keepdims=True))
            ctx_heads.append(_bf16_dot(p, vh))        # (SEQ, D_KV)
        ctx = jnp.concatenate(ctx_heads, axis=-1)     # (SEQ, INNER)
        x = x + _bf16_dot(ctx, wo_ref[li])            # residual

        # --------------------------- FFN block -------------------------------
        h = rmsnorm(x, ln2_ref[pl.ds(li, 1), :])
        g = jnp.maximum(_bf16_dot(h, wi_ref[li]), 0.0)   # dense-relu-dense
        x = x + _bf16_dot(g, woff_ref[li])

    x = rmsnorm(x, lnf_ref[...])                      # final T5 layer norm

    # ----------------------- Splinter QA scoring head ------------------------
    # se = [S | E]  ->  xse = [X@S | X@E];  start/end = (X@S/E) @ X.T
    xse = _bf16_dot(x, se_ref[...])                   # (SEQ, 2*DIM)
    start = _bf16_dot_t(xse[:, :DIM], x)              # (SEQ, SEQ) == X_T @ S @ X
    end = _bf16_dot_t(xse[:, DIM:], x)                # (SEQ, SEQ) == X_T @ E @ X
    o_ref[...] = jnp.concatenate([start, end], axis=-1)   # (SEQ, 2*DIM)


def _full_spec(shape):
    n = len(shape)
    return pl.BlockSpec(shape, lambda b, n=n: (0,) * n)


def pallas_encoder_head(x_emb, pos_bias, params):
    """x_emb: (B*L, D) f32, pos_bias: (H, L, L) f32 -> (B*L, 2*D) scores."""
    in_specs = [
        pl.BlockSpec((SEQ, DIM), lambda b: (b, 0)),                # x_emb
        _full_spec((NUM_HEADS, SEQ, SEQ)),                         # pos_bias
        _full_spec((NUM_LAYERS, DIM)),                             # ln1
        _full_spec((NUM_LAYERS, DIM)),                             # ln2
        _full_spec((NUM_LAYERS, DIM, 3 * INNER)),                  # wqkv
        _full_spec((NUM_LAYERS, INNER, DIM)),                      # wo
        _full_spec((NUM_LAYERS, DIM, D_FF)),                       # wi
        _full_spec((NUM_LAYERS, D_FF, DIM)),                       # wo_ff
        _full_spec((1, DIM)),                                      # ln_final
        _full_spec((DIM, 2 * DIM)),                                # se = [S|E]
    ]
    compiler_params = (_CompilerParams(dimension_semantics=("parallel",))
                       if _CompilerParams is not None else None)
    return pl.pallas_call(
        _encoder_head_kernel,
        out_shape=jax.ShapeDtypeStruct((BATCH * SEQ, 2 * DIM), jnp.float32),
        grid=(BATCH,),
        in_specs=in_specs,
        out_specs=pl.BlockSpec((SEQ, 2 * DIM), lambda b: (b, 0)),
        compiler_params=compiler_params,
    )(x_emb, pos_bias, params['ln1'], params['ln2'], params['wqkv'],
      params['wo'], params['wi'], params['wo_ff'], params['ln_final'],
      params['se'])


# -------------------- scalar-prefetch question-row gather --------------------
def _gather_kernel(qidx_ref, rows_ref, o_ref):
    del qidx_ref   # used only inside the index_map
    o_ref[...] = rows_ref[...]


def pallas_question_gather(scores_3d, q_idx, num_q):
    """scores_3d: (B*L, 1, W); q_idx: (num_q,) int32 -> (num_q, 1, W)."""
    _, _, w = scores_3d.shape
    grid_spec = pltpu.PrefetchScalarGridSpec(
        num_scalar_prefetch=1,
        grid=(num_q,),
        in_specs=[pl.BlockSpec((1, 1, w), lambda i, qidx: (qidx[i], 0, 0))],
        out_specs=pl.BlockSpec((1, 1, w), lambda i, qidx: (i, 0, 0)),
    )
    return pl.pallas_call(
        _gather_kernel,
        out_shape=jax.ShapeDtypeStruct((num_q, 1, w), jnp.float32),
        grid_spec=grid_spec,
    )(q_idx, scores_3d)


# ------------------------- plain-JAX glue (setup only) -----------------------
def _relative_position_bucket(rel_pos, num_buckets=NUM_BUCKETS,
                              max_distance=MAX_DISTANCE):
    # HF T5 bidirectional bucketing.
    num_buckets //= 2
    buckets = (rel_pos > 0).astype(jnp.int32) * num_buckets
    rel_pos = jnp.abs(rel_pos)
    max_exact = num_buckets // 2
    is_small = rel_pos < max_exact
    rel_big = max_exact + (
        jnp.log(jnp.maximum(rel_pos, 1).astype(jnp.float32) / max_exact)
        / np.log(max_distance / max_exact) * (num_buckets - max_exact)
    ).astype(jnp.int32)
    rel_big = jnp.minimum(rel_big, num_buckets - 1)
    return buckets + jnp.where(is_small, rel_pos, rel_big)


def compute_position_bias(rel_table, length):
    ctx = jnp.arange(length, dtype=jnp.int32)[:, None]
    mem = jnp.arange(length, dtype=jnp.int32)[None, :]
    buckets = _relative_position_bucket(mem - ctx)            # (L, L)
    bias = rel_table[buckets]                                  # (L, L, H)
    return jnp.transpose(bias, (2, 0, 1))                      # (H, L, L)


def init_params(key):
    keys = jax.random.split(key, 4 + NUM_LAYERS)
    wqkv, wo, wi, wo_ff = [], [], [], []
    for li in range(NUM_LAYERS):
        lk = jax.random.split(keys[4 + li], 6)
        wq = jax.random.normal(lk[0], (DIM, INNER), jnp.float32) * 0.05
        wk = jax.random.normal(lk[1], (DIM, INNER), jnp.float32) * 0.05
        wv = jax.random.normal(lk[2], (DIM, INNER), jnp.float32) * 0.05
        wqkv.append(jnp.concatenate([wq, wk, wv], axis=1))     # (DIM, 3*INNER)
        wo.append(jax.random.normal(lk[3], (INNER, DIM), jnp.float32) * 0.05)
        wi.append(jax.random.normal(lk[4], (DIM, D_FF), jnp.float32) * 0.05)
        wo_ff.append(jax.random.normal(lk[5], (D_FF, DIM), jnp.float32) * 0.05)
    s_mat = jax.random.normal(keys[2], (DIM, DIM), jnp.float32)   # torch.randn
    e_mat = jax.random.normal(keys[3], (DIM, DIM), jnp.float32)
    return {
        'embed': jax.random.normal(keys[0], (VOCAB, DIM), jnp.float32),
        'rel_bias': jax.random.normal(keys[1], (NUM_BUCKETS, NUM_HEADS),
                                      jnp.float32) * 0.1,
        'ln1': jnp.ones((NUM_LAYERS, DIM), jnp.float32),
        'ln2': jnp.ones((NUM_LAYERS, DIM), jnp.float32),
        'ln_final': jnp.ones((1, DIM), jnp.float32),
        # MXU inputs pre-cast to bf16 (accumulation stays f32 inside kernel).
        'wqkv': jnp.stack(wqkv).astype(jnp.bfloat16),
        'wo': jnp.stack(wo).astype(jnp.bfloat16),
        'wi': jnp.stack(wi).astype(jnp.bfloat16),
        'wo_ff': jnp.stack(wo_ff).astype(jnp.bfloat16),
        'se': jnp.concatenate([s_mat, e_mat], axis=1).astype(jnp.bfloat16),
    }


# --------------------------------- forward -----------------------------------
@functools.partial(jax.jit, static_argnames=("num_q",))
def splinter_forward(params, input_ids, *, num_q):
    """Reproduces SplinterT5Model.forward (num_q = number of MASK tokens)."""
    b, l = input_ids.shape
    flat_ids = input_ids.reshape(-1)
    x_emb = jnp.take(params['embed'], flat_ids, axis=0)        # (B*L, D)
    pos_bias = compute_position_bias(params['rel_bias'], l)    # (H, L, L)

    # scores_all[r] = [start_all.view(-1, DIM)[r], end_all.view(-1, DIM)[r]]
    scores_all = pallas_encoder_head(x_emb, pos_bias, params)  # (B*L, 2*D)

    # question_indices = (input_ids == MASK_ID).view(-1), gathered on device
    q_idx = jnp.flatnonzero(flat_ids == MASK_ID, size=num_q,
                            fill_value=0).astype(jnp.int32)
    gathered = pallas_question_gather(
        scores_all.reshape(b * l, 1, 2 * DIM), q_idx, num_q)   # (num_q, 1, 2D)
    gathered = gathered.reshape(num_q, 2 * DIM)
    start_scores = gathered[:, :DIM]
    end_scores = gathered[:, DIM:]
    return jnp.concatenate([start_scores, end_scores], axis=0)  # (2*num_q, DIM)

# TODO(synk): generate() (softmax/argmax span decoding + input slicing) is
# host-side control flow; only the forward pass is reproduced.


if __name__ == "__main__":
    key = jax.random.PRNGKey(0)
    k_param, k_ids = jax.random.split(key)

    params = init_params(k_param)

    input_ids = jax.random.randint(k_ids, (BATCH, SEQ), 0, 32000,
                                   dtype=jnp.int32)
    # plant one sentinel (MASK_ID) token per sequence
    input_ids = input_ids.at[0, 5].set(MASK_ID).at[1, 10].set(MASK_ID)

    # number of question tokens (static for the jitted forward), read once
    # from the concrete input before launching the device pipeline.
    num_questions = int(jnp.sum(input_ids == MASK_ID))

    scores = splinter_forward(params, input_ids, num_q=num_questions)
    scores = jax.block_until_ready(scores)

    assert scores.shape == (2 * num_questions, DIM), scores.shape
    assert bool(jnp.all(jnp.isfinite(scores)))
    print("KERNEL_OK")
</pallas_src>

<mosaic_0001>
module attributes {stable_mosaic.version = 11 : i64} {
  func.func private @main(%arg0: i32) attributes {dimension_semantics = [#tpu.dimension_semantics<core_parallel>], iteration_bounds = array<i64: 2>, tpu.core_type = #tpu.core_type<sc_scalar_subcore>, window_params = []} {
    return
  }
}

module attributes {stable_mosaic.version = 11 : i64} {
  func.func private @main(%arg0: i32) attributes {dimension_semantics = [#tpu.dimension_semantics<core_parallel>], iteration_bounds = array<i64: 2>, tpu.core_type = #tpu.core_type<sc_scalar_subcore>, window_params = []} {
    return
  }
}

module attributes {stable_mosaic.version = 11 : i64} {
  func.func @_encoder_head_kernel(%arg0: i32, %arg1: memref<32x32xf32, #tpu.memory_space<vmem>>, %arg2: memref<4x32x32xf32, #tpu.memory_space<vmem>>, %arg3: memref<2x32xf32, #tpu.memory_space<vmem>>, %arg4: memref<2x32xf32, #tpu.memory_space<vmem>>, %arg5: memref<2x32x96xbf16, #tpu.memory_space<vmem>>, %arg6: memref<2x32x32xbf16, #tpu.memory_space<vmem>>, %arg7: memref<2x32x64xbf16, #tpu.memory_space<vmem>>, %arg8: memref<2x64x32xbf16, #tpu.memory_space<vmem>>, %arg9: memref<1x32xf32, #tpu.memory_space<vmem>>, %arg10: memref<32x64xbf16, #tpu.memory_space<vmem>>, %arg11: memref<32x64xf32, #tpu.memory_space<vmem>>) attributes {dimension_semantics = [#tpu.dimension_semantics<parallel>], iteration_bounds = array<i64: 2>, scalar_prefetch = 0 : i64, scratch_operands = 0 : i64, tpu.core_type = #tpu.core_type<tc>, window_params = [{transform_indices = @transform_0, window_bounds = array<i64: 32, 32>}, {pipeline_mode = #tpu.pipeline_mode<synchronous>, transform_indices = @transform_1, window_bounds = array<i64: 4, 32, 32>}, {pipeline_mode = #tpu.pipeline_mode<synchronous>, transform_indices = @transform_2, window_bounds = array<i64: 2, 32>}, {pipeline_mode = #tpu.pipeline_mode<synchronous>, transform_indices = @transform_3, window_bounds = array<i64: 2, 32>}, {pipeline_mode = #tpu.pipeline_mode<synchronous>, transform_indices = @transform_4, window_bounds = array<i64: 2, 32, 96>}, {pipeline_mode = #tpu.pipeline_mode<synchronous>, transform_indices = @transform_5, window_bounds = array<i64: 2, 32, 32>}, {pipeline_mode = #tpu.pipeline_mode<synchronous>, transform_indices = @transform_6, window_bounds = array<i64: 2, 32, 64>}, {pipeline_mode = #tpu.pipeline_mode<synchronous>, transform_indices = @transform_7, window_bounds = array<i64: 2, 64, 32>}, {pipeline_mode = #tpu.pipeline_mode<synchronous>, transform_indices = @transform_8, window_bounds = array<i64: 1, 32>}, {pipeline_mode = #tpu.pipeline_mode<synchronous>, transform_indices = @transform_9, window_bounds = array<i64: 32, 64>}, {transform_indices = @transform_10, window_bounds = array<i64: 32, 64>}]} {
    %c0 = arith.constant 0 : index
    %c0_0 = arith.constant 0 : index
    %0 = vector.load %arg1[%c0, %c0_0] : memref<32x32xf32, #tpu.memory_space<vmem>>, vector<32x32xf32>
    %c0_1 = arith.constant 0 : index
    %c0_2 = arith.constant 0 : index
    %1 = vector.load %arg3[%c0_1, %c0_2] : memref<2x32xf32, #tpu.memory_space<vmem>>, vector<1x32xf32>
    %2 = arith.mulf %0, %0 : vector<32x32xf32>
    %cst = arith.constant dense<0.000000e+00> : vector<32xf32>
    %3 = vector.multi_reduction <add>, %2, %cst [1] : vector<32x32xf32> to vector<32xf32>
    %4 = vector.shape_cast %3 : vector<32xf32> to vector<32x1xf32>
    %cst_3 = arith.constant 3.200000e+01 : f32
    %5 = vector.broadcast %cst_3 : f32 to vector<32x1xf32>
    %6 = arith.divf %4, %5 : vector<32x1xf32>
    %cst_4 = arith.constant 9.99999997E-7 : f32
    %7 = vector.broadcast %cst_4 : f32 to vector<32x1xf32>
    %8 = arith.addf %6, %7 : vector<32x1xf32>
    %9 = math.rsqrt %8 : vector<32x1xf32>
    %10 = vector.broadcast %9 : vector<32x1xf32> to vector<32x32xf32>
    %11 = arith.mulf %0, %10 : vector<32x32xf32>
    %12 = vector.broadcast %1 : vector<1x32xf32> to vector<32x32xf32>
    %13 = arith.mulf %11, %12 : vector<32x32xf32>
    %c0_5 = arith.constant 0 : index
    %c0_6 = arith.constant 0 : index
    %c0_7 = arith.constant 0 : index
    %14 = vector.load %arg5[%c0_5, %c0_6, %c0_7] : memref<2x32x96xbf16, #tpu.memory_space<vmem>>, vector<1x32x96xbf16>
    %15 = vector.shape_cast %14 : vector<1x32x96xbf16> to vector<32x96xbf16>
    %16 = arith.truncf %13 : vector<32x32xf32> to vector<32x32xbf16>
    %cst_8 = arith.constant dense<0.000000e+00> : vector<32x96xf32>
    %17 = tpu.matmul %16, %15, %cst_8 {dimension_numbers = #tpu.dot_dimension_numbers<[1], [0], [0], [1], [0, 0, 1, 1], [], []>} : vector<32x32xbf16>, vector<32x96xbf16>, vector<32x96xf32> -> vector<32x96xf32>
    %18 = vector.extract_strided_slice %17 {offsets = [0, 0], sizes = [32, 8], strides = [1, 1]} : vector<32x96xf32> to vector<32x8xf32>
    %19 = vector.extract_strided_slice %17 {offsets = [0, 32], sizes = [32, 8], strides = [1, 1]} : vector<32x96xf32> to vector<32x8xf32>
    %20 = vector.extract_strided_slice %17 {offsets = [0, 64], sizes = [32, 8], strides = [1, 1]} : vector<32x96xf32> to vector<32x8xf32>
    %21 = arith.truncf %18 : vector<32x8xf32> to vector<32x8xbf16>
    %22 = arith.truncf %19 : vector<32x8xf32> to vector<32x8xbf16>
    %cst_9 = arith.constant dense<0.000000e+00> : vector<32x32xf32>
    %23 = tpu.matmul %21, %22, %cst_9 {dimension_numbers = #tpu.dot_dimension_numbers<[1], [1], [0], [0], [0, 0, 1, 0], [], []>} : vector<32x8xbf16>, vector<32x8xbf16>, vector<32x32xf32> -> vector<32x32xf32>
    %c0_10 = arith.constant 0 : index
    %c0_11 = arith.constant 0 : index
    %c0_12 = arith.constant 0 : index
    %24 = vector.load %arg2[%c0_10, %c0_11, %c0_12] : memref<4x32x32xf32, #tpu.memory_space<vmem>>, vector<1x32x32xf32>
    %25 = vector.shape_cast %24 : vector<1x32x32xf32> to vector<32x32xf32>
    %26 = arith.addf %23, %25 : vector<32x32xf32>
    %cst_13 = arith.constant dense<0xFF800000> : vector<32xf32>
    %27 = vector.multi_reduction <maximumf>, %26, %cst_13 [1] : vector<32x32xf32> to vector<32xf32>
    %28 = vector.shape_cast %27 : vector<32xf32> to vector<32x1xf32>
    %29 = vector.broadcast %28 : vector<32x1xf32> to vector<32x32xf32>
    %30 = arith.subf %26, %29 : vector<32x32xf32>
    %31 = math.exp %30 : vector<32x32xf32>
    %cst_14 = arith.constant dense<0.000000e+00> : vector<32xf32>
    %32 = vector.multi_reduction <add>, %31, %cst_14 [1] : vector<32x32xf32> to vector<32xf32>
    %33 = vector.shape_cast %32 : vector<32xf32> to vector<32x1xf32>
    %34 = tpu.reciprocal %33 {approx = true} : vector<32x1xf32> -> vector<32x1xf32>
    %35 = vector.broadcast %34 : vector<32x1xf32> to vector<32x32xf32>
    %36 = arith.mulf %31, %35 : vector<32x32xf32>
    %37 = arith.truncf %36 : vector<32x32xf32> to vector<32x32xbf16>
    %38 = arith.truncf %20 : vector<32x8xf32> to vector<32x8xbf16>
    %cst_15 = arith.constant dense<0.000000e+00> : vector<32x8xf32>
    %39 = tpu.matmul %37, %38, %cst_15 {dimension_numbers = #tpu.dot_dimension_numbers<[1], [0], [0], [1], [0, 0, 1, 1], [], []>} : vector<32x32xbf16>, vector<32x8xbf16>, vector<32x8xf32> -> vector<32x8xf32>
    %40 = vector.extract_strided_slice %17 {offsets = [0, 8], sizes = [32, 8], strides = [1, 1]} : vector<32x96xf32> to vector<32x8xf32>
    %41 = vector.extract_strided_slice %17 {offsets = [0, 40], sizes = [32, 8], strides = [1, 1]} : vector<32x96xf32> to vector<32x8xf32>
    %42 = vector.extract_strided_slice %17 {offsets = [0, 72], sizes = [32, 8], strides = [1, 1]} : vector<32x96xf32> to vector<32x8xf32>
    %43 = arith.truncf %40 : vector<32x8xf32> to vector<32x8xbf16>
    %44 = arith.truncf %41 : vector<32x8xf32> to vector<32x8xbf16>
    %cst_16 = arith.constant dense<0.000000e+00> : vector<32x32xf32>
    %45 = tpu.matmul %43, %44, %cst_16 {dimension_numbers = #tpu.dot_dimension_numbers<[1], [1], [0], [0], [0, 0, 1, 0], [], []>} : vector<32x8xbf16>, vector<32x8xbf16>, vector<32x32xf32> -> vector<32x32xf32>
    %c1 = arith.constant 1 : index
    %c0_17 = arith.constant 0 : index
    %c0_18 = arith.constant 0 : index
    %46 = vector.load %arg2[%c1, %c0_17, %c0_18] : memref<4x32x32xf32, #tpu.memory_space<vmem>>, vector<1x32x32xf32>
    %47 = vector.shape_cast %46 : vector<1x32x32xf32> to vector<32x32xf32>
    %48 = arith.addf %45, %47 : vector<32x32xf32>
    %cst_19 = arith.constant dense<0xFF800000> : vector<32xf32>
    %49 = vector.multi_reduction <maximumf>, %48, %cst_19 [1] : vector<32x32xf32> to vector<32xf32>
    %50 = vector.shape_cast %49 : vector<32xf32> to vector<32x1xf32>
    %51 = vector.broadcast %50 : vector<32x1xf32> to vector<32x32xf32>
    %52 = arith.subf %48, %51 : vector<32x32xf32>
    %53 = math.exp %52 : vector<32x32xf32>
    %cst_20 = arith.constant dense<0.000000e+00> : vector<32xf32>
    %54 = vector.multi_reduction <add>, %53, %cst_20 [1] : vector<32x32xf32> to vector<32xf32>
    %55 = vector.shape_cast %54 : vector<32xf32> to vector<32x1xf32>
    %56 = tpu.reciprocal %55 {approx = true} : vector<32x1xf32> -> vector<32x1xf32>
    %57 = vector.broadcast %56 : vector<32x1xf32> to vector<32x32xf32>
    %58 = arith.mulf %53, %57 : vector<32x32xf32>
    %59 = arith.truncf %58 : vector<32x32xf32> to vector<32x32xbf16>
    %60 = arith.truncf %42 : vector<32x8xf32> to vector<32x8xbf16>
    %cst_21 = arith.constant dense<0.000000e+00> : vector<32x8xf32>
    %61 = tpu.matmul %59, %60, %cst_21 {dimension_numbers = #tpu.dot_dimension_numbers<[1], [0], [0], [1], [0, 0, 1, 1], [], []>} : vector<32x32xbf16>, vector<32x8xbf16>, vector<32x8xf32> -> vector<32x8xf32>
    %62 = vector.extract_strided_slice %17 {offsets = [0, 16], sizes = [32, 8], strides = [1, 1]} : vector<32x96xf32> to vector<32x8xf32>
    %63 = vector.extract_strided_slice %17 {offsets = [0, 48], sizes = [32, 8], strides = [1, 1]} : vector<32x96xf32> to vector<32x8xf32>
    %64 = vector.extract_strided_slice %17 {offsets = [0, 80], sizes = [32, 8], strides = [1, 1]} : vector<32x96xf32> to vector<32x8xf32>
    %65 = arith.truncf %62 : vector<32x8xf32> to vector<32x8xbf16>
    %66 = arith.truncf %63 : vector<32x8xf32> to vector<32x8xbf16>
    %cst_22 = arith.constant dense<0.000000e+00> : vector<32x32xf32>
    %67 = tpu.matmul %65, %66, %cst_22 {dimension_numbers = #tpu.dot_dimension_numbers<[1], [1], [0], [0], [0, 0, 1, 0], [], []>} : vector<32x8xbf16>, vector<32x8xbf16>, vector<32x32xf32> -> vector<32x32xf32>
    %c2 = arith.constant 2 : index
    %c0_23 = arith.constant 0 : index
    %c0_24 = arith.constant 0 : index
    %68 = vector.load %arg2[%c2, %c0_23, %c0_24] : memref<4x32x32xf32, #tpu.memory_space<vmem>>, vector<1x32x32xf32>
    %69 = vector.shape_cast %68 : vector<1x32x32xf32> to vector<32x32xf32>
    %70 = arith.addf %67, %69 : vector<32x32xf32>
    %cst_25 = arith.constant dense<0xFF800000> : vector<32xf32>
    %71 = vector.multi_reduction <maximumf>, %70, %cst_25 [1] : vector<32x32xf32> to vector<32xf32>
    %72 = vector.shape_cast %71 : vector<32xf32> to vector<32x1xf32>
    %73 = vector.broadcast %72 : vector<32x1xf32> to vector<32x32xf32>
    %74 = arith.subf %70, %73 : vector<32x32xf32>
    %75 = math.exp %74 : vector<32x32xf32>
    %cst_26 = arith.constant dense<0.000000e+00> : vector<32xf32>
    %76 = vector.multi_reduction <add>, %75, %cst_26 [1] : vector<32x32xf32> to vector<32xf32>
    %77 = vector.shape_cast %76 : vector<32xf32> to vector<32x1xf32>
    %78 = tpu.reciprocal %77 {approx = true} : vector<32x1xf32> -> vector<32x1xf32>
    %79 = vector.broadcast %78 : vector<32x1xf32> to vector<32x32xf32>
    %80 = arith.mulf %75, %79 : vector<32x32xf32>
    %81 = arith.truncf %80 : vector<32x32xf32> to vector<32x32xbf16>
    %82 = arith.truncf %64 : vector<32x8xf32> to vector<32x8xbf16>
    %cst_27 = arith.constant dense<0.000000e+00> : vector<32x8xf32>
    %83 = tpu.matmul %81, %82, %cst_27 {dimension_numbers = #tpu.dot_dimension_numbers<[1], [0], [0], [1], [0, 0, 1, 1], [], []>} : vector<32x32xbf16>, vector<32x8xbf16>, vector<32x8xf32> -> vector<32x8xf32>
    %84 = vector.extract_strided_slice %17 {offsets = [0, 24], sizes = [32, 8], strides = [1, 1]} : vector<32x96xf32> to vector<32x8xf32>
    %85 = vector.extract_strided_slice %17 {offsets = [0, 56], sizes = [32, 8], strides = [1, 1]} : vector<32x96xf32> to vector<32x8xf32>
    %86 = vector.extract_strided_slice %17 {offsets = [0, 88], sizes = [32, 8], strides = [1, 1]} : vector<32x96xf32> to vector<32x8xf32>
    %87 = arith.truncf %84 : vector<32x8xf32> to vector<32x8xbf16>
    %88 = arith.truncf %85 : vector<32x8xf32> to vector<32x8xbf16>
    %cst_28 = arith.constant dense<0.000000e+00> : vector<32x32xf32>
    %89 = tpu.matmul %87, %88, %cst_28 {dimension_numbers = #tpu.dot_dimension_numbers<[1], [1], [0], [0], [0, 0, 1, 0], [], []>} : vector<32x8xbf16>, vector<32x8xbf16>, vector<32x32xf32> -> vector<32x32xf32>
    %c3 = arith.constant 3 : index
    %c0_29 = arith.constant 0 : index
    %c0_30 = arith.constant 0 : index
    %90 = vector.load %arg2[%c3, %c0_29, %c0_30] : memref<4x32x32xf32, #tpu.memory_space<vmem>>, vector<1x32x32xf32>
    %91 = vector.shape_cast %90 : vector<1x32x32xf32> to vector<32x32xf32>
    %92 = arith.addf %89, %91 : vector<32x32xf32>
    %cst_31 = arith.constant dense<0xFF800000> : vector<32xf32>
    %93 = vector.multi_reduction <maximumf>, %92, %cst_31 [1] : vector<32x32xf32> to vector<32xf32>
    %94 = vector.shape_cast %93 : vector<32xf32> to vector<32x1xf32>
    %95 = vector.broadcast %94 : vector<32x1xf32> to vector<32x32xf32>
    %96 = arith.subf %92, %95 : vector<32x32xf32>
    %97 = math.exp %96 : vector<32x32xf32>
    %cst_32 = arith.constant dense<0.000000e+00> : vector<32xf32>
    %98 = vector.multi_reduction <add>, %97, %cst_32 [1] : vector<32x32xf32> to vector<32xf32>
    %99 = vector.shape_cast %98 : vector<32xf32> to vector<32x1xf32>
    %100 = tpu.reciprocal %99 {approx = true} : vector<32x1xf32> -> vector<32x1xf32>
    %101 = vector.broadcast %100 : vector<32x1xf32> to vector<32x32xf32>
    %102 = arith.mulf %97, %101 : vector<32x32xf32>
    %103 = arith.truncf %102 : vector<32x32xf32> to vector<32x32xbf16>
    %104 = arith.truncf %86 : vector<32x8xf32> to vector<32x8xbf16>
    %cst_33 = arith.constant dense<0.000000e+00> : vector<32x8xf32>
    %105 = tpu.matmul %103, %104, %cst_33 {dimension_numbers = #tpu.dot_dimension_numbers<[1], [0], [0], [1], [0, 0, 1, 1], [], []>} : vector<32x32xbf16>, vector<32x8xbf16>, vector<32x8xf32> -> vector<32x8xf32>
    %106 = tpu.concatenate %39, %61, %83, %105 in 1 : vector<32x8xf32>, vector<32x8xf32>, vector<32x8xf32>, vector<32x8xf32> -> vector<32x32xf32>
    %c0_34 = arith.constant 0 : index
    %c0_35 = arith.constant 0 : index
    %c0_36 = arith.constant 0 : index
    %107 = vector.load %arg6[%c0_34, %c0_35, %c0_36] : memref<2x32x32xbf16, #tpu.memory_space<vmem>>, vector<1x32x32xbf16>
    %108 = vector.shape_cast %107 : vector<1x32x32xbf16> to vector<32x32xbf16>
    %109 = arith.truncf %106 : vector<32x32xf32> to vector<32x32xbf16>
    %cst_37 = arith.constant dense<0.000000e+00> : vector<32x32xf32>
    %110 = tpu.matmul %109, %108, %cst_37 {dimension_numbers = #tpu.dot_dimension_numbers<[1], [0], [0], [1], [0, 0, 1, 1], [], []>} : vector<32x32xbf16>, vector<32x32xbf16>, vector<32x32xf32> -> vector<32x32xf32>
    %111 = arith.addf %0, %110 : vector<32x32xf32>
    %c0_38 = arith.constant 0 : index
    %c0_39 = arith.constant 0 : index
    %112 = vector.load %arg4[%c0_38, %c0_39] : memref<2x32xf32, #tpu.memory_space<vmem>>, vector<1x32xf32>
    %113 = arith.mulf %111, %111 : vector<32x32xf32>
    %cst_40 = arith.constant dense<0.000000e+00> : vector<32xf32>
    %114 = vector.multi_reduction <add>, %113, %cst_40 [1] : vector<32x32xf32> to vector<32xf32>
    %115 = vector.shape_cast %114 : vector<32xf32> to vector<32x1xf32>
    %cst_41 = arith.constant 3.200000e+01 : f32
    %116 = vector.broadcast %cst_41 : f32 to vector<32x1xf32>
    %117 = arith.divf %115, %116 : vector<32x1xf32>
    %cst_42 = arith.constant 9.99999997E-7 : f32
    %118 = vector.broadcast %cst_42 : f32 to vector<32x1xf32>
    %119 = arith.addf %117, %118 : vector<32x1xf32>
    %120 = math.rsqrt %119 : vector<32x1xf32>
    %121 = vector.broadcast %120 : vector<32x1xf32> to vector<32x32xf32>
    %122 = arith.mulf %111, %121 : vector<32x32xf32>
    %123 = vector.broadcast %112 : vector<1x32xf32> to vector<32x32xf32>
    %124 = arith.mulf %122, %123 : vector<32x32xf32>
    %c0_43 = arith.constant 0 : index
    %c0_44 = arith.constant 0 : index
    %c0_45 = arith.constant 0 : index
    %125 = vector.load %arg7[%c0_43, %c0_44, %c0_45] : memref<2x32x64xbf16, #tpu.memory_space<vmem>>, vector<1x32x64xbf16>
    %126 = vector.shape_cast %125 : vector<1x32x64xbf16> to vector<32x64xbf16>
    %127 = arith.truncf %124 : vector<32x32xf32> to vector<32x32xbf16>
    %cst_46 = arith.constant dense<0.000000e+00> : vector<32x64xf32>
    %128 = tpu.matmul %127, %126, %cst_46 {dimension_numbers = #tpu.dot_dimension_numbers<[1], [0], [0], [1], [0, 0, 1, 1], [], []>} : vector<32x32xbf16>, vector<32x64xbf16>, vector<32x64xf32> -> vector<32x64xf32>
    %cst_47 = arith.constant 0.000000e+00 : f32
    %129 = vector.broadcast %cst_47 : f32 to vector<32x64xf32>
    %130 = arith.maximumf %128, %129 : vector<32x64xf32>
    %c0_48 = arith.constant 0 : index
    %c0_49 = arith.constant 0 : index
    %c0_50 = arith.constant 0 : index
    %131 = vector.load %arg8[%c0_48, %c0_49, %c0_50] : memref<2x64x32xbf16, #tpu.memory_space<vmem>>, vector<1x64x32xbf16>
    %132 = vector.shape_cast %131 : vector<1x64x32xbf16> to vector<64x32xbf16>
    %133 = arith.truncf %130 : vector<32x64xf32> to vector<32x64xbf16>
    %cst_51 = arith.constant dense<0.000000e+00> : vector<32x32xf32>
    %134 = tpu.matmul %133, %132, %cst_51 {dimension_numbers = #tpu.dot_dimension_numbers<[1], [0], [0], [1], [0, 0, 1, 1], [], []>} : vector<32x64xbf16>, vector<64x32xbf16>, vector<32x32xf32> -> vector<32x32xf32>
    %135 = arith.addf %111, %134 : vector<32x32xf32>
    %c1_52 = arith.constant 1 : index
    %c0_53 = arith.constant 0 : index
    %136 = vector.load %arg3[%c1_52, %c0_53] : memref<2x32xf32, #tpu.memory_space<vmem>>, vector<1x32xf32>
    %137 = arith.mulf %135, %135 : vector<32x32xf32>
    %cst_54 = arith.constant dense<0.000000e+00> : vector<32xf32>
    %138 = vector.multi_reduction <add>, %137, %cst_54 [1] : vector<32x32xf32> to vector<32xf32>
    %139 = vector.shape_cast %138 : vector<32xf32> to vector<32x1xf32>
    %cst_55 = arith.constant 3.200000e+01 : f32
    %140 = vector.broadcast %cst_55 : f32 to vector<32x1xf32>
    %141 = arith.divf %139, %140 : vector<32x1xf32>
    %cst_56 = arith.constant 9.99999997E-7 : f32
    %142 = vector.broadcast %cst_56 : f32 to vector<32x1xf32>
    %143 = arith.addf %141, %142 : vector<32x1xf32>
    %144 = math.rsqrt %143 : vector<32x1xf32>
    %145 = vector.broadcast %144 : vector<32x1xf32> to vector<32x32xf32>
    %146 = arith.mulf %135, %145 : vector<32x32xf32>
    %147 = vector.broadcast %136 : vector<1x32xf32> to vector<32x32xf32>
    %148 = arith.mulf %146, %147 : vector<32x32xf32>
    %c1_57 = arith.constant 1 : index
    %c0_58 = arith.constant 0 : index
    %c0_59 = arith.constant 0 : index
    %149 = vector.load %arg5[%c1_57, %c0_58, %c0_59] : memref<2x32x96xbf16, #tpu.memory_space<vmem>>, vector<1x32x96xbf16>
    %150 = vector.shape_cast %149 : vector<1x32x96xbf16> to vector<32x96xbf16>
    %151 = arith.truncf %148 : vector<32x32xf32> to vector<32x32xbf16>
    %cst_60 = arith.constant dense<0.000000e+00> : vector<32x96xf32>
    %152 = tpu.matmul %151, %150, %cst_60 {dimension_numbers = #tpu.dot_dimension_numbers<[1], [0], [0], [1], [0, 0, 1, 1], [], []>} : vector<32x32xbf16>, vector<32x96xbf16>, vector<32x96xf32> -> vector<32x96xf32>
    %153 = vector.extract_strided_slice %152 {offsets = [0, 0], sizes = [32, 8], strides = [1, 1]} : vector<32x96xf32> to vector<32x8xf32>
    %154 = vector.extract_strided_slice %152 {offsets = [0, 32], sizes = [32, 8], strides = [1, 1]} : vector<32x96xf32> to vector<32x8xf32>
    %155 = vector.extract_strided_slice %152 {offsets = [0, 64], sizes = [32, 8], strides = [1, 1]} : vector<32x96xf32> to vector<32x8xf32>
    %156 = arith.truncf %153 : vector<32x8xf32> to vector<32x8xbf16>
    %157 = arith.truncf %154 : vector<32x8xf32> to vector<32x8xbf16>
    %cst_61 = arith.constant dense<0.000000e+00> : vector<32x32xf32>
    %158 = tpu.matmul %156, %157, %cst_61 {dimension_numbers = #tpu.dot_dimension_numbers<[1], [1], [0], [0], [0, 0, 1, 0], [], []>} : vector<32x8xbf16>, vector<32x8xbf16>, vector<32x32xf32> -> vector<32x32xf32>
    %c0_62 = arith.constant 0 : index
    %c0_63 = arith.constant 0 : index
    %c0_64 = arith.constant 0 : index
    %159 = vector.load %arg2[%c0_62, %c0_63, %c0_64] : memref<4x32x32xf32, #tpu.memory_space<vmem>>, vector<1x32x32xf32>
    %160 = vector.shape_cast %159 : vector<1x32x32xf32> to vector<32x32xf32>
    %161 = arith.addf %158, %160 : vector<32x32xf32>
    %cst_65 = arith.constant dense<0xFF800000> : vector<32xf32>
    %162 = vector.multi_reduction <maximumf>, %161, %cst_65 [1] : vector<32x32xf32> to vector<32xf32>
    %163 = vector.shape_cast %162 : vector<32xf32> to vector<32x1xf32>
    %164 = vector.broadcast %163 : vector<32x1xf32> to vector<32x32xf32>
    %165 = arith.subf %161, %164 : vector<32x32xf32>
    %166 = math.exp %165 : vector<32x32xf32>
    %cst_66 = arith.constant dense<0.000000e+00> : vector<32xf32>
    %167 = vector.multi_reduction <add>, %166, %cst_66 [1] : vector<32x32xf32> to vector<32xf32>
    %168 = vector.shape_cast %167 : vector<32xf32> to vector<32x1xf32>
    %169 = tpu.reciprocal %168 {approx = true} : vector<32x1xf32> -> vector<32x1xf32>
    %170 = vector.broadcast %169 : vector<32x1xf32> to vector<32x32xf32>
    %171 = arith.mulf %166, %170 : vector<32x32xf32>
    %172 = arith.truncf %171 : vector<32x32xf32> to vector<32x32xbf16>
    %173 = arith.truncf %155 : vector<32x8xf32> to vector<32x8xbf16>
    %cst_67 = arith.constant dense<0.000000e+00> : vector<32x8xf32>
    %174 = tpu.matmul %172, %173, %cst_67 {dimension_numbers = #tpu.dot_dimension_numbers<[1], [0], [0], [1], [0, 0, 1, 1], [], []>} : vector<32x32xbf16>, vector<32x8xbf16>, vector<32x8xf32> -> vector<32x8xf32>
    %175 = vector.extract_strided_slice %152 {offsets = [0, 8], sizes = [32, 8], strides = [1, 1]} : vector<32x96xf32> to vector<32x8xf32>
    %176 = vector.extract_strided_slice %152 {offsets = [0, 40], sizes = [32, 8], strides = [1, 1]} : vector<32x96xf32> to vector<32x8xf32>
    %177 = vector.extract_strided_slice %152 {offsets = [0, 72], sizes = [32, 8], strides = [1, 1]} : vector<32x96xf32> to vector<32x8xf32>
    %178 = arith.truncf %175 : vector<32x8xf32> to vector<32x8xbf16>
    %179 = arith.truncf %176 : vector<32x8xf32> to vector<32x8xbf16>
    %cst_68 = arith.constant dense<0.000000e+00> : vector<32x32xf32>
    %180 = tpu.matmul %178, %179, %cst_68 {dimension_numbers = #tpu.dot_dimension_numbers<[1], [1], [0], [0], [0, 0, 1, 0], [], []>} : vector<32x8xbf16>, vector<32x8xbf16>, vector<32x32xf32> -> vector<32x32xf32>
    %c1_69 = arith.constant 1 : index
    %c0_70 = arith.constant 0 : index
    %c0_71 = arith.constant 0 : index
    %181 = vector.load %arg2[%c1_69, %c0_70, %c0_71] : memref<4x32x32xf32, #tpu.memory_space<vmem>>, vector<1x32x32xf32>
    %182 = vector.shape_cast %181 : vector<1x32x32xf32> to vector<32x32xf32>
    %183 = arith.addf %180, %182 : vector<32x32xf32>
    %cst_72 = arith.constant dense<0xFF800000> : vector<32xf32>
    %184 = vector.multi_reduction <maximumf>, %183, %cst_72 [1] : vector<32x32xf32> to vector<32xf32>
    %185 = vector.shape_cast %184 : vector<32xf32> to vector<32x1xf32>
    %186 = vector.broadcast %185 : vector<32x1xf32> to vector<32x32xf32>
    %187 = arith.subf %183, %186 : vector<32x32xf32>
    %188 = math.exp %187 : vector<32x32xf32>
    %cst_73 = arith.constant dense<0.000000e+00> : vector<32xf32>
    %189 = vector.multi_reduction <add>, %188, %cst_73 [1] : vector<32x32xf32> to vector<32xf32>
    %190 = vector.shape_cast %189 : vector<32xf32> to vector<32x1xf32>
    %191 = tpu.reciprocal %190 {approx = true} : vector<32x1xf32> -> vector<32x1xf32>
    %192 = vector.broadcast %191 : vector<32x1xf32> to vector<32x32xf32>
    %193 = arith.mulf %188, %192 : vector<32x32xf32>
    %194 = arith.truncf %193 : vector<32x32xf32> to vector<32x32xbf16>
    %195 = arith.truncf %177 : vector<32x8xf32> to vector<32x8xbf16>
    %cst_74 = arith.constant dense<0.000000e+00> : vector<32x8xf32>
    %196 = tpu.matmul %194, %195, %cst_74 {dimension_numbers = #tpu.dot_dimension_numbers<[1], [0], [0], [1], [0, 0, 1, 1], [], []>} : vector<32x32xbf16>, vector<32x8xbf16>, vector<32x8xf32> -> vector<32x8xf32>
    %197 = vector.extract_strided_slice %152 {offsets = [0, 16], sizes = [32, 8], strides = [1, 1]} : vector<32x96xf32> to vector<32x8xf32>
    %198 = vector.extract_strided_slice %152 {offsets = [0, 48], sizes = [32, 8], strides = [1, 1]} : vector<32x96xf32> to vector<32x8xf32>
    %199 = vector.extract_strided_slice %152 {offsets = [0, 80], sizes = [32, 8], strides = [1, 1]} : vector<32x96xf32> to vector<32x8xf32>
    %200 = arith.truncf %197 : vector<32x8xf32> to vector<32x8xbf16>
    %201 = arith.truncf %198 : vector<32x8xf32> to vector<32x8xbf16>
    %cst_75 = arith.constant dense<0.000000e+00> : vector<32x32xf32>
    %202 = tpu.matmul %200, %201, %cst_75 {dimension_numbers = #tpu.dot_dimension_numbers<[1], [1], [0], [0], [0, 0, 1, 0], [], []>} : vector<32x8xbf16>, vector<32x8xbf16>, vector<32x32xf32> -> vector<32x32xf32>
    %c2_76 = arith.constant 2 : index
    %c0_77 = arith.constant 0 : index
    %c0_78 = arith.constant 0 : index
    %203 = vector.load %arg2[%c2_76, %c0_77, %c0_78] : memref<4x32x32xf32, #tpu.memory_space<vmem>>, vector<1x32x32xf32>
    %204 = vector.shape_cast %203 : vector<1x32x32xf32> to vector<32x32xf32>
    %205 = arith.addf %202, %204 : vector<32x32xf32>
    %cst_79 = arith.constant dense<0xFF800000> : vector<32xf32>
    %206 = vector.multi_reduction <maximumf>, %205, %cst_79 [1] : vector<32x32xf32> to vector<32xf32>
    %207 = vector.shape_cast %206 : vector<32xf32> to vector<32x1xf32>
    %208 = vector.broadcast %207 : vector<32x1xf32> to vector<32x32xf32>
    %209 = arith.subf %205, %208 : vector<32x32xf32>
    %210 = math.exp %209 : vector<32x32xf32>
    %cst_80 = arith.constant dense<0.000000e+00> : vector<32xf32>
    %211 = vector.multi_reduction <add>, %210, %cst_80 [1] : vector<32x32xf32> to vector<32xf32>
    %212 = vector.shape_cast %211 : vector<32xf32> to vector<32x1xf32>
    %213 = tpu.reciprocal %212 {approx = true} : vector<32x1xf32> -> vector<32x1xf32>
    %214 = vector.broadcast %213 : vector<32x1xf32> to vector<32x32xf32>
    %215 = arith.mulf %210, %214 : vector<32x32xf32>
    %216 = arith.truncf %215 : vector<32x32xf32> to vector<32x32xbf16>
    %217 = arith.truncf %199 : vector<32x8xf32> to vector<32x8xbf16>
    %cst_81 = arith.constant dense<0.000000e+00> : vector<32x8xf32>
    %218 = tpu.matmul %216, %217, %cst_81 {dimension_numbers = #tpu.dot_dimension_numbers<[1], [0], [0], [1], [0, 0, 1, 1], [], []>} : vector<32x32xbf16>, vector<32x8xbf16>, vector<32x8xf32> -> vector<32x8xf32>
    %219 = vector.extract_strided_slice %152 {offsets = [0, 24], sizes = [32, 8], strides = [1, 1]} : vector<32x96xf32> to vector<32x8xf32>
    %220 = vector.extract_strided_slice %152 {offsets = [0, 56], sizes = [32, 8], strides = [1, 1]} : vector<32x96xf32> to vector<32x8xf32>
    %221 = vector.extract_strided_slice %152 {offsets = [0, 88], sizes = [32, 8], strides = [1, 1]} : vector<32x96xf32> to vector<32x8xf32>
    %222 = arith.truncf %219 : vector<32x8xf32> to vector<32x8xbf16>
    %223 = arith.truncf %220 : vector<32x8xf32> to vector<32x8xbf16>
    %cst_82 = arith.constant dense<0.000000e+00> : vector<32x32xf32>
    %224 = tpu.matmul %222, %223, %cst_82 {dimension_numbers = #tpu.dot_dimension_numbers<[1], [1], [0], [0], [0, 0, 1, 0], [], []>} : vector<32x8xbf16>, vector<32x8xbf16>, vector<32x32xf32> -> vector<32x32xf32>
    %c3_83 = arith.constant 3 : index
    %c0_84 = arith.constant 0 : index
    %c0_85 = arith.constant 0 : index
    %225 = vector.load %arg2[%c3_83, %c0_84, %c0_85] : memref<4x32x32xf32, #tpu.memory_space<vmem>>, vector<1x32x32xf32>
    %226 = vector.shape_cast %225 : vector<1x32x32xf32> to vector<32x32xf32>
    %227 = arith.addf %224, %226 : vector<32x32xf32>
    %cst_86 = arith.constant dense<0xFF800000> : vector<32xf32>
    %228 = vector.multi_reduction <maximumf>, %227, %cst_86 [1] : vector<32x32xf32> to vector<32xf32>
    %229 = vector.shape_cast %228 : vector<32xf32> to vector<32x1xf32>
    %230 = vector.broadcast %229 : vector<32x1xf32> to vector<32x32xf32>
    %231 = arith.subf %227, %230 : vector<32x32xf32>
    %232 = math.exp %231 : vector<32x32xf32>
    %cst_87 = arith.constant dense<0.000000e+00> : vector<32xf32>
    %233 = vector.multi_reduction <add>, %232, %cst_87 [1] : vector<32x32xf32> to vector<32xf32>
    %234 = vector.shape_cast %233 : vector<32xf32> to vector<32x1xf32>
    %235 = tpu.reciprocal %234 {approx = true} : vector<32x1xf32> -> vector<32x1xf32>
    %236 = vector.broadcast %235 : vector<32x1xf32> to vector<32x32xf32>
    %237 = arith.mulf %232, %236 : vector<32x32xf32>
    %238 = arith.truncf %237 : vector<32x32xf32> to vector<32x32xbf16>
    %239 = arith.truncf %221 : vector<32x8xf32> to vector<32x8xbf16>
    %cst_88 = arith.constant dense<0.000000e+00> : vector<32x8xf32>
    %240 = tpu.matmul %238, %239, %cst_88 {dimension_numbers = #tpu.dot_dimension_numbers<[1], [0], [0], [1], [0, 0, 1, 1], [], []>} : vector<32x32xbf16>, vector<32x8xbf16>, vector<32x8xf32> -> vector<32x8xf32>
    %241 = tpu.concatenate %174, %196, %218, %240 in 1 : vector<32x8xf32>, vector<32x8xf32>, vector<32x8xf32>, vector<32x8xf32> -> vector<32x32xf32>
    %c1_89 = arith.constant 1 : index
    %c0_90 = arith.constant 0 : index
    %c0_91 = arith.constant 0 : index
    %242 = vector.load %arg6[%c1_89, %c0_90, %c0_91] : memref<2x32x32xbf16, #tpu.memory_space<vmem>>, vector<1x32x32xbf16>
    %243 = vector.shape_cast %242 : vector<1x32x32xbf16> to vector<32x32xbf16>
    %244 = arith.truncf %241 : vector<32x32xf32> to vector<32x32xbf16>
    %cst_92 = arith.constant dense<0.000000e+00> : vector<32x32xf32>
    %245 = tpu.matmul %244, %243, %cst_92 {dimension_numbers = #tpu.dot_dimension_numbers<[1], [0], [0], [1], [0, 0, 1, 1], [], []>} : vector<32x32xbf16>, vector<32x32xbf16>, vector<32x32xf32> -> vector<32x32xf32>
    %246 = arith.addf %135, %245 : vector<32x32xf32>
    %c1_93 = arith.constant 1 : index
    %c0_94 = arith.constant 0 : index
    %247 = vector.load %arg4[%c1_93, %c0_94] : memref<2x32xf32, #tpu.memory_space<vmem>>, vector<1x32xf32>
    %248 = arith.mulf %246, %246 : vector<32x32xf32>
    %cst_95 = arith.constant dense<0.000000e+00> : vector<32xf32>
    %249 = vector.multi_reduction <add>, %248, %cst_95 [1] : vector<32x32xf32> to vector<32xf32>
    %250 = vector.shape_cast %249 : vector<32xf32> to vector<32x1xf32>
    %cst_96 = arith.constant 3.200000e+01 : f32
    %251 = vector.broadcast %cst_96 : f32 to vector<32x1xf32>
    %252 = arith.divf %250, %251 : vector<32x1xf32>
    %cst_97 = arith.constant 9.99999997E-7 : f32
    %253 = vector.broadcast %cst_97 : f32 to vector<32x1xf32>
    %254 = arith.addf %252, %253 : vector<32x1xf32>
    %255 = math.rsqrt %254 : vector<32x1xf32>
    %256 = vector.broadcast %255 : vector<32x1xf32> to vector<32x32xf32>
    %257 = arith.mulf %246, %256 : vector<32x32xf32>
    %258 = vector.broadcast %247 : vector<1x32xf32> to vector<32x32xf32>
    %259 = arith.mulf %257, %258 : vector<32x32xf32>
    %c1_98 = arith.constant 1 : index
    %c0_99 = arith.constant 0 : index
    %c0_100 = arith.constant 0 : index
    %260 = vector.load %arg7[%c1_98, %c0_99, %c0_100] : memref<2x32x64xbf16, #tpu.memory_space<vmem>>, vector<1x32x64xbf16>
    %261 = vector.shape_cast %260 : vector<1x32x64xbf16> to vector<32x64xbf16>
    %262 = arith.truncf %259 : vector<32x32xf32> to vector<32x32xbf16>
    %cst_101 = arith.constant dense<0.000000e+00> : vector<32x64xf32>
    %263 = tpu.matmul %262, %261, %cst_101 {dimension_numbers = #tpu.dot_dimension_numbers<[1], [0], [0], [1], [0, 0, 1, 1], [], []>} : vector<32x32xbf16>, vector<32x64xbf16>, vector<32x64xf32> -> vector<32x64xf32>
    %cst_102 = arith.constant 0.000000e+00 : f32
    %264 = vector.broadcast %cst_102 : f32 to vector<32x64xf32>
    %265 = arith.maximumf %263, %264 : vector<32x64xf32>
    %c1_103 = arith.constant 1 : index
    %c0_104 = arith.constant 0 : index
    %c0_105 = arith.constant 0 : index
    %266 = vector.load %arg8[%c1_103, %c0_104, %c0_105] : memref<2x64x32xbf16, #tpu.memory_space<vmem>>, vector<1x64x32xbf16>
    %267 = vector.shape_cast %266 : vector<1x64x32xbf16> to vector<64x32xbf16>
    %268 = arith.truncf %265 : vector<32x64xf32> to vector<32x64xbf16>
    %cst_106 = arith.constant dense<0.000000e+00> : vector<32x32xf32>
    %269 = tpu.matmul %268, %267, %cst_106 {dimension_numbers = #tpu.dot_dimension_numbers<[1], [0], [0], [1], [0, 0, 1, 1], [], []>} : vector<32x64xbf16>, vector<64x32xbf16>, vector<32x32xf32> -> vector<32x32xf32>
    %270 = arith.addf %246, %269 : vector<32x32xf32>
    %c0_107 = arith.constant 0 : index
    %c0_108 = arith.constant 0 : index
    %271 = vector.load %arg9[%c0_107, %c0_108] : memref<1x32xf32, #tpu.memory_space<vmem>>, vector<1x32xf32>
    %272 = arith.mulf %270, %270 : vector<32x32xf32>
    %cst_109 = arith.constant dense<0.000000e+00> : vector<32xf32>
    %273 = vector.multi_reduction <add>, %272, %cst_109 [1] : vector<32x32xf32> to vector<32xf32>
    %274 = vector.shape_cast %273 : vector<32xf32> to vector<32x1xf32>
    %cst_110 = arith.constant 3.200000e+01 : f32
    %275 = vector.broadcast %cst_110 : f32 to vector<32x1xf32>
    %276 = arith.divf %274, %275 : vector<32x1xf32>
    %cst_111 = arith.constant 9.99999997E-7 : f32
    %277 = vector.broadcast %cst_111 : f32 to vector<32x1xf32>
    %278 = arith.addf %276, %277 : vector<32x1xf32>
    %279 = math.rsqrt %278 : vector<32x1xf32>
    %280 = vector.broadcast %279 : vector<32x1xf32> to vector<32x32xf32>
    %281 = arith.mulf %270, %280 : vector<32x32xf32>
    %282 = vector.broadcast %271 : vector<1x32xf32> to vector<32x32xf32>
    %283 = arith.mulf %281, %282 : vector<32x32xf32>
    %c0_112 = arith.constant 0 : index
    %c0_113 = arith.constant 0 : index
    %284 = vector.load %arg10[%c0_112, %c0_113] : memref<32x64xbf16, #tpu.memory_space<vmem>>, vector<32x64xbf16>
    %285 = arith.truncf %283 : vector<32x32xf32> to vector<32x32xbf16>
    %cst_114 = arith.constant dense<0.000000e+00> : vector<32x64xf32>
    %286 = tpu.matmul %285, %284, %cst_114 {dimension_numbers = #tpu.dot_dimension_numbers<[1], [0], [0], [1], [0, 0, 1, 1], [], []>} : vector<32x32xbf16>, vector<32x64xbf16>, vector<32x64xf32> -> vector<32x64xf32>
    %287 = vector.extract_strided_slice %286 {offsets = [0, 0], sizes = [32, 32], strides = [1, 1]} : vector<32x64xf32> to vector<32x32xf32>
    %288 = arith.truncf %287 : vector<32x32xf32> to vector<32x32xbf16>
    %289 = arith.truncf %283 : vector<32x32xf32> to vector<32x32xbf16>
    %cst_115 = arith.constant dense<0.000000e+00> : vector<32x32xf32>
    %290 = tpu.matmul %288, %289, %cst_115 {dimension_numbers = #tpu.dot_dimension_numbers<[1], [1], [0], [0], [0, 0, 1, 0], [], []>} : vector<32x32xbf16>, vector<32x32xbf16>, vector<32x32xf32> -> vector<32x32xf32>
    %291 = vector.extract_strided_slice %286 {offsets = [0, 32], sizes = [32, 32], strides = [1, 1]} : vector<32x64xf32> to vector<32x32xf32>
    %292 = arith.truncf %291 : vector<32x32xf32> to vector<32x32xbf16>
    %293 = arith.truncf %283 : vector<32x32xf32> to vector<32x32xbf16>
    %cst_116 = arith.constant dense<0.000000e+00> : vector<32x32xf32>
    %294 = tpu.matmul %292, %293, %cst_116 {dimension_numbers = #tpu.dot_dimension_numbers<[1], [1], [0], [0], [0, 0, 1, 0], [], []>} : vector<32x32xbf16>, vector<32x32xbf16>, vector<32x32xf32> -> vector<32x32xf32>
    %295 = tpu.concatenate %290, %294 in 1 : vector<32x32xf32>, vector<32x32xf32> -> vector<32x64xf32>
    %c0_117 = arith.constant 0 : index
    %c0_118 = arith.constant 0 : index
    %296 = vector.load %arg11[%c0_117, %c0_118] : memref<32x64xf32, #tpu.memory_space<vmem>>, vector<32x64xf32>
    tpu.vector_store %arg11[%c0_117, %c0_118], %295 {strides = array<i32>} : memref<32x64xf32, #tpu.memory_space<vmem>>, vector<32x64xf32>,
    return
  }
  func.func @transform_0(%arg0: i32) -> (i32, i32) {
    %c0_i32 = arith.constant 0 : i32
    %c0_i32_0 = arith.constant 0 : i32
    return %arg0, %c0_i32 : i32, i32
  }
  func.func @transform_1(%arg0: i32) -> (i32, i32, i32) {
    %c0_i32 = arith.constant 0 : i32
    %c0_i32_0 = arith.constant 0 : i32
    %c0_i32_1 = arith.constant 0 : i32
    %c0_i32_2 = arith.constant 0 : i32
    return %c0_i32, %c0_i32_0, %c0_i32_1 : i32, i32, i32
  }
  func.func @transform_2(%arg0: i32) -> (i32, i32) {
    %c0_i32 = arith.constant 0 : i32
    %c0_i32_0 = arith.constant 0 : i32
    %c0_i32_1 = arith.constant 0 : i32
    return %c0_i32, %c0_i32_0 : i32, i32
  }
  func.func @transform_3(%arg0: i32) -> (i32, i32) {
    %c0_i32 = arith.constant 0 : i32
    %c0_i32_0 = arith.constant 0 : i32
    %c0_i32_1 = arith.constant 0 : i32
    return %c0_i32, %c0_i32_0 : i32, i32
  }
  func.func @transform_4(%arg0: i32) -> (i32, i32, i32) {
    %c0_i32 = arith.constant 0 : i32
    %c0_i32_0 = arith.constant 0 : i32
    %c0_i32_1 = arith.constant 0 : i32
    %c0_i32_2 = arith.constant 0 : i32
    return %c0_i32, %c0_i32_0, %c0_i32_1 : i32, i32, i32
  }
  func.func @transform_5(%arg0: i32) -> (i32, i32, i32) {
    %c0_i32 = arith.constant 0 : i32
    %c0_i32_0 = arith.constant 0 : i32
    %c0_i32_1 = arith.constant 0 : i32
    %c0_i32_2 = arith.constant 0 : i32
    return %c0_i32, %c0_i32_0, %c0_i32_1 : i32, i32, i32
  }
  func.func @transform_6(%arg0: i32) -> (i32, i32, i32) {
    %c0_i32 = arith.constant 0 : i32
    %c0_i32_0 = arith.constant 0 : i32
    %c0_i32_1 = arith.constant 0 : i32
    %c0_i32_2 = arith.constant 0 : i32
    return %c0_i32, %c0_i32_0, %c0_i32_1 : i32, i32, i32
  }
  func.func @transform_7(%arg0: i32) -> (i32, i32, i32) {
    %c0_i32 = arith.constant 0 : i32
    %c0_i32_0 = arith.constant 0 : i32
    %c0_i32_1 = arith.constant 0 : i32
    %c0_i32_2 = arith.constant 0 : i32
    return %c0_i32, %c0_i32_0, %c0_i32_1 : i32, i32, i32
  }
  func.func @transform_8(%arg0: i32) -> (i32, i32) {
    %c0_i32 = arith.constant 0 : i32
    %c0_i32_0 = arith.constant 0 : i32
    %c0_i32_1 = arith.constant 0 : i32
    return %c0_i32, %c0_i32_0 : i32, i32
  }
  func.func @transform_9(%arg0: i32) -> (i32, i32) {
    %c0_i32 = arith.constant 0 : i32
    %c0_i32_0 = arith.constant 0 : i32
    %c0_i32_1 = arith.constant 0 : i32
    return %c0_i32, %c0_i32_0 : i32, i32
  }
  func.func @transform_10(%arg0: i32) -> (i32, i32) {
    %c0_i32 = arith.constant 0 : i32
    %c0_i32_0 = arith.constant 0 : i32
    return %arg0, %c0_i32 : i32, i32
  }
}

module attributes {stable_mosaic.version = 11 : i64} {
  func.func @_gather_kernel(%arg0: i32, %arg1: memref<2xi32, #tpu.memory_space<smem>>, %arg2: memref<1x1x64xf32, #tpu.memory_space<vmem>>, %arg3: memref<1x1x64xf32, #tpu.memory_space<vmem>>) attributes {dimension_semantics = [#tpu.dimension_semantics<arbitrary>], iteration_bounds = array<i64: 2>, scalar_prefetch = 1 : i64, scratch_operands = 0 : i64, tpu.core_type = #tpu.core_type<tc>, window_params = [{transform_indices = @transform_0, window_bounds = array<i64: 1, 1, 64>}, {transform_indices = @transform_1, window_bounds = array<i64: 1, 1, 64>}]} {
    %c0 = arith.constant 0 : index
    %c0_0 = arith.constant 0 : index
    %c0_1 = arith.constant 0 : index
    %0 = vector.load %arg2[%c0, %c0_0, %c0_1] : memref<1x1x64xf32, #tpu.memory_space<vmem>>, vector<1x1x64xf32>
    %c0_2 = arith.constant 0 : index
    %c0_3 = arith.constant 0 : index
    %c0_4 = arith.constant 0 : index
    %1 = vector.load %arg3[%c0_2, %c0_3, %c0_4] : memref<1x1x64xf32, #tpu.memory_space<vmem>>, vector<1x1x64xf32>
    tpu.vector_store %arg3[%c0_2, %c0_3, %c0_4], %0 {strides = array<i32>} : memref<1x1x64xf32, #tpu.memory_space<vmem>>, vector<1x1x64xf32>,
    return
  }
  func.func @transform_0(%arg0: i32, %arg1: memref<2xi32, #tpu.memory_space<smem>>) -> (i32, i32, i32) {
    %0 = arith.index_cast %arg0 : i32 to index
    %1 = memref.load %arg1[%0] : memref<2xi32, #tpu.memory_space<smem>>
    %c0_i32 = arith.constant 0 : i32
    %c0_i32_0 = arith.constant 0 : i32
    %c0_i32_1 = arith.constant 0 : i32
    return %1, %c0_i32, %c0_i32_0 : i32, i32, i32
  }
  func.func @transform_1(%arg0: i32, %arg1: memref<2xi32, #tpu.memory_space<smem>>) -> (i32, i32, i32) {
    %c0_i32 = arith.constant 0 : i32
    %c0_i32_0 = arith.constant 0 : i32
    %c0_i32_1 = arith.constant 0 : i32
    return %arg0, %c0_i32, %c0_i32_0 : i32, i32, i32
  }
}

</mosaic_0001>

<bundles_post_ra>
// kernel: splinter_forward.3
= control target key start
LH: loop header
LB: loop body
LE: loop exit
PB: predicated region body
PF: predicated region fallthrough
CT: control target
= control target key end

     0   :  { %s231_s0 = inlined_call_operand.vmem [shape: s32[2], index: 0, kind: input, shape index: {}]   ;;  %s232_s1 = inlined_call_operand.vmem [shape: f32[64,1,64], index: 1, kind: input, shape index: {}]   ;;  %s233_s2 = inlined_call_operand.vmem [shape: f32[2,1,64], index: 2, kind: output, shape index: {}]  }
   0x1   :  { %s7_s11 = sshll.u32 %s231_s0, 4  ;;  %s8_s11 = int_to_ptr.vmem [resolvable:$true] %s7_s11 }
   0x2   :  { %s184_s12 = scalar_lea.vmem %s8_s11, 16  ;;  %p189_p1 = scmp.lt.s32.totalorder %s8_s11, %s8_s11 }
   0x3   :  { %p185_p0 = scmp.ne.s32.totalorder %s8_s11, %s184_s12  ;;  %p190_p2 = scmp.lt.s32.totalorder %s184_s12, %s184_s12 }
   0x5   :  { %p191_p3 = por %p190_p2, %p189_p1 }
   0x7   :  { %p192_p4 = pnand %p191_p3, %p185_p0 }
   0x9   :  { %195 = shalt.err (!%p192_p4)  }
   0xa   :  { %s206_s13 = smov [#allocation3]  }
   0xb   :  { %10 = dma.vmem_to_smem %s8_s11, 16, %s206_s13, [#allocation2] }
   0xc   :  { %200 = dma.done.wait [#allocation2], 16 }
   0xd   :  { %201 = vsyncadd [#allocation2], 4294967280 }
   0xe   :  { %12 = sfence }
   0xf   :  { %s202_s14 = smov 0  }
  0x10 LB: > { %s168_s15 = sadd.s32 4294967295, %s204_s14   ;;  %p172_p5 = scmp.ge.s32.totalorder %s204_s14, 1  ;;  %s204_s14 = sphi %s202_s14, %s18_s14  }
  0x11   : > { %p96_p6 = scmp.lt.s32.totalorder %s204_s14, 3 }
  0x13   : > { %p97_p7 = pnand %p172_p5, %p96_p6 }
  0x14   : > { %s113_s0 = sld [smem:[#allocation3 + %s168_s15]] (!%p97_p7)  ;;  %p118_p8 = scmp.lt.s32.totalorder (!%p97_p7), %s168_s15, 1  ;;  %vm122_vm0 = vcmask (!%p97_p7), 516096  }
  0x15   : > { %100 = sbr.rel (%p97_p7) target bundleno = 32 (0x20), region = 24 }
  0x1a   : > { %p114_p9 = scmp.lt.s32.totalorder (!%p97_p7), %s113_s0, 63 }
  0x1c   : > { %s235_s15 = smov (!%p118_p8, %s168_s15), 1  ;;  %s237_s0 = smov (!%p114_p9, %s113_s0), 63 }
  0x1d   : > { %s120_s18 = scalar_lea.vmem %s233_s2, %s235_s15  ;;  %s116_s21 = scalar_lea.vmem %s232_s1, %s237_s0 }
  0x1e   : > { %v121_v0 = vld [vmem:[%s116_s21] sm:$0x1] }
  0x1f   : > { %123 = vst.msk [vmem:[%s120_s18] sm:$0x1] %vm122_vm0, %v121_v0 }
  0x20 PF: > { %s18_s14 = sadd.s32 1, %s204_s14  }
  0x21   : > { %p15_p10 = scmp.ge.s32.totalorder %s18_s14, 4  }
  0x23   :  { %17 = sbr.rel (!%p15_p10) target bundleno = 16 (0x10), region = 54 }

// kernel: splinter_forward.2
= control target key start
LH: loop header
LB: loop body
LE: loop exit
PB: predicated region body
PF: predicated region fallthrough
CT: control target
= control target key end

     0   :  { %s3894_s13 = smov 0   ;;  %s4559_s0 = inlined_call_operand.vmem [shape: f32[64,32], index: 0, kind: input, shape index: {}]   ;;  %s4560_s1 = inlined_call_operand.vmem [shape: f32[4,32,32], index: 1, kind: input, shape index: {}]   ;;  %s4561_s2 = inlined_call_operand.vmem [shape: f32[2,32], index: 2, kind: input, shape index: {}]   ;;  %s4562_s3 = inlined_call_operand.vmem [shape: f32[2,32], index: 3, kind: input, shape index: {}]   ;;  %s4563_s4 = inlined_call_operand.vmem [shape: bf16[2,32,96], index: 4, kind: input, shape index: {}]   ;;  %s4564_s5 = inlined_call_operand.vmem [shape: bf16[2,32,32], index: 5, kind: input, shape index: {}]   ;;  %s4565_s6 = inlined_call_operand.vmem [shape: bf16[2,32,64], index: 6, kind: input, shape index: {}]   ;;  %s4566_s7 = inlined_call_operand.vmem [shape: bf16[2,64,32], index: 7, kind: input, shape index: {}]   ;;  %s4567_s8 = inlined_call_operand.vmem [shape: f32[1,32], index: 8, kind: input, shape index: {}]   ;;  %s4568_s9 = inlined_call_operand.vmem [shape: bf16[32,64], index: 9, kind: input, shape index: {}]   ;;  %s4569_s10 = inlined_call_operand.vmem [shape: f32[64,64], index: 10, kind: output, shape index: {}]  }
   0x1 LB: > { %s3043_s14 = sadd.s32 4294967295, %s3822_s13   ;;  %p3047_p0 = scmp.ge.s32.totalorder %s3822_s13, 1  ;;  %s3822_s13 = sphi %s3894_s13, %s20_s13  }
   0x2   : > { %p313_p1 = scmp.lt.s32.totalorder %s3822_s13, 3 }
   0x4   : > { %p314_p2 = pnand %p3047_p0, %p313_p1 }
   0x5   : > { %s3048_s15 = sshll.u32 (!%p314_p2), %s3043_s14, 2  ;;  %vm373_vm0 = vcmask (!%p314_p2), 261120   ;;  %v3606_v12 = vld [vmem:[%s4563_s4] sm:$0xff] (!%p314_p2)   ;;  %v3607_v13 = vld [vmem:[%s4563_s4 + $0x8] sm:$0xff] (!%p314_p2)   ;;  %vm496_vm1 = vcmask (!%p314_p2), 64512   ;;  %s3824_s26 = smov (!%p314_p2), 96  }
   0x6   : > { %317 = sbr.rel (%p314_p2) target bundleno = 8670 (0x21de), region = 60  ;;  %p352_p3 = scmp.lt.s32.totalorder (!%p314_p2), %s3048_s15, 7  ;;  %3279 = vmatprep.subr.bf16.mxu0 (!%p314_p2), %v3606_v12  ;;  %v3052_v30 = vld [vmem:[%s4561_s2] ss:$0 sm:$0xff] (!%p314_p2)  ;;  %v489_v54 = vld [vmem:[%s4560_s1 + $0x18] sm:$0xff] (!%p314_p2)  ;;  %v487_v55 = vld [vmem:[%s4560_s1 + $0x8] sm:$0xff] (!%p314_p2) }
   0x7   : > { %3280 = vmatpush3.bf16.msra.mxu0 (!%p314_p2), %v3606_v12  ;;  %v486_v51 = vld [vmem:[%s4560_s1] sm:$0xff] (!%p314_p2)  ;;  %v488_v58 = vld [vmem:[%s4560_s1 + $0x10] sm:$0xff] (!%p314_p2)  ;;  %s3825_s18 = smov (!%p314_p2), 64   ;;  %s3826_s20 = smov (!%p314_p2), 88   ;;  %vm1260_vm2 = vcmask (!%p314_p2), 130048   ;;  %vm1265_vm3 = vcmask (!%p314_p2), 195584  }
   0x8   : > { %3281 = vmatprep.subr.bf16.mxu0 (!%p314_p2), %v3607_v13  ;;  %s3827_s21 = smov (!%p314_p2), 120   ;;  %s3828_s11 = smov (!%p314_p2), 56   ;;  %vm1499_vm4 = vcmask (!%p314_p2), 523264  }
   0x9   : > { %s3829_s12 = smov (!%p314_p2), 80   ;;  %s3830_s14 = smov (!%p314_p2), 112  }
   0xa   : > { %s3831_s30 = smov (!%p314_p2), 48   ;;  %s3832_s17 = smov (!%p314_p2), 72  }
   0xb   : > { %3282 = vmatpush3.bf16.msra.mxu0 (!%p314_p2), %v3607_v13  ;;  %s3833_s22 = smov (!%p314_p2), 104   ;;  %s4575_s24 = smov (!%p314_p2), 8  }
   0xc   : > { %s4571_s25 = smov (!%p314_p2), 16  }
   0xd   : > { %s4585_s15 = smov (!%p352_p3, %s3048_s15), 7 }
   0xe   : > { %s4570_s16 = sshll.u32 %s4585_s15, 3 }
   0xf   : > { %s3910_s19 = scalar_lea.vmem %s4559_s0, %s4570_s16  ;;  %s4577_s16 = smov 40  }
  0x10   : > { %v366_v0 = vld [vmem:[%s3910_s19 + $0x10] sm:$0xff]  ;;  %v364_v1 = vld [vmem:[%s3910_s19] sm:$0xff]  ;;  %v367_v2 = vld [vmem:[%s3910_s19 + $0x18] sm:$0xff] }
  0x11   : > { %v371_v3 = vmul.f32 %v366_v0, %v366_v0  ;;  %v369_v4 = vmul.f32 %v364_v1, %v364_v1  ;;  %v372_v5 = vmul.f32 %v367_v2, %v367_v2  ;;  %v365_v6 = vld [vmem:[%s3910_s19 + $0x8] sm:$0xff] }
  0x12   : > { %v370_v7 = vmul.f32 %v365_v6, %v365_v6 }
  0x13   : > { %v380_v8 = vsel %vm373_vm0, %v371_v3, 0.0  ;;  %v374_v9 = vsel %vm373_vm0, %v369_v4, 0.0  ;;  %v383_v10 = vsel %vm373_vm0, %v372_v5, 0.0 }
  0x14   : > { %381 = vadd.xlane.f32.xlu1 %v380_v8  ;;  %375 = vadd.xlane.f32.xlu0 %v374_v9  ;;  %v377_v11 = vsel %vm373_vm0, %v370_v7, 0.0 }
  0x18   : > { %384 = vadd.xlane.f32.xlu1 %v383_v10  ;;  %378 = vadd.xlane.f32.xlu0 %v377_v11 }
  0xa1   : > { %v382_v14 = vpop.xlane.xlu1 %381  ;;  %v376_v15 = vpop.xlane.xlu0 %375 }
  0xa2   : > { %v389_v16 = vmul.f32 0.03125, %v382_v14  ;;  %v387_v17 = vmul.f32 0.03125, %v376_v15 }
  0xa4   : > { %v393_v18 = vadd.f32 1e-06, %v389_v16  ;;  %v391_v19 = vadd.f32 1e-06, %v387_v17 }
  0xa5   : > { %v385_v20 = vpop.xlane.xlu1 %384  ;;  %v379_v21 = vpop.xlane.xlu0 %378 }
  0xa6   : > { %3628 = vrsqrt.f32 %v393_v18  ;;  %v390_v22 = vmul.f32 0.03125, %v385_v20  ;;  %v388_v23 = vmul.f32 0.03125, %v379_v21 }
  0xa7   : > { %3630 = vrsqrt.f32 %v391_v19 }
  0xa8   : > { %v394_v24 = vadd.f32 1e-06, %v390_v22  ;;  %v392_v25 = vadd.f32 1e-06, %v388_v23 }
  0xaa   : > { %3632 = vrsqrt.f32 %v394_v24 }
  0xab   : > { %3634 = vrsqrt.f32 %v392_v25 }
  0xb0   : > { %v3629_v26 = vpop.eup %3628 }
  0xb1   : > { %v3631_v27 = vpop.eup %3630  ;;  %v401_v28 = vmul.f32 %v3629_v26, %v366_v0 }
  0xb2   : > { %v399_v31 = vmul.f32 %v3631_v27, %v364_v1 }
  0xb3   : > { %v409_v35 = vmul.f32 %v3052_v30, %v401_v28 }
  0xb4   : > { %v3633_v29 = vpop.eup %3632  ;;  %v407_v37 = vmul.f32 %v3052_v30, %v399_v31 }
  0xb5   : > { %v3635_v32 = vpop.eup %3634  ;;  %v402_v33 = vmul.f32 %v3633_v29, %v367_v2 }
  0xb6   : > { %v400_v34 = vmul.f32 %v3635_v32, %v365_v6 }
  0xb7   : > { %v410_v36 = vmul.f32 %v3052_v30, %v402_v33 }
  0xb8   : > { %v408_v38 = vmul.f32 %v3052_v30, %v400_v34 }
  0xb9   : > { %v416_v39 = vpack.c.bf16 %v410_v36, %v409_v35 }
  0xba   : > { %v415_v40 = vpack.c.bf16 %v408_v38, %v407_v37 }
  0xbc   : > { %3283 = vmatprep.mubr.msk.bf16.mxu0 %vm373_vm0, %v415_v40 }
  0xbd   : > { %3284 = vmatmul.mubr.msk.bf16.vlgmr.msra.gmra.mrb[0].mxu0 %vm373_vm0, %v416_v39 }
 0x190   : > { %v3285_v41 = vpop.f32.mrb[0].mxu0 }
 0x191   : > { %v469_v42 = vpop.f32.mrb[1].mxu0 }
 0x192   : > { %v3286_v43 = vpop.f32.mrb[2].mxu0 }
 0x193   : > { %v3931_v44 = vpack.c.bf16 %v3286_v43, %v3285_v41  ;;  %v472_v45 = vpop.f32.mrb[3].mxu0 }
 0x194   : > { %v3933_v46 = vpack.c.bf16 %v472_v45, %v469_v42 }
 0x195   : > { %494 = vrot.lane.b32.xlu1 %v3931_v44, %s3824_s26 }
 0x196   : > { %492 = vrot.lane.b32.xlu0 %v3933_v46, %s3824_s26  ;;  %3291 = vmatprep.mubr.msk.bf16.mxu1 %vm496_vm1, %v3933_v46 }
 0x207   : > { %v495_v49 = vpop.permute.xlu1 %494 }
 0x208   : > { %v493_v47 = vpop.permute.xlu0 %492  ;;  %v507_v50 = vsel %vm496_vm1, %v495_v49, 0 }
 0x209   : > { %3503 = vmatprep.subr.msk.bf16.mxu1 %vm496_vm1, %v493_v47  ;;  %v504_v48 = vsel %vm496_vm1, %v493_v47, 0 }
 0x20a   : > { %3288 = vmatpush3.bf16.xpose.msra.mxu1 %v504_v48 }
 0x20b   : > { %3504 = vmatprep.subr.msk.bf16.mxu1 %vm496_vm1, %v495_v49 }
 0x212   : > { %3290 = vmatpush3.bf16.xpose.msra.mxu1 %v507_v50 }
 0x219   : > { %3292 = vmatmul.mubr.msk.bf16.vlgmr.msra.gmra.mrb[0].mxu1 %vm496_vm1, %v3931_v44 }
 0x2ec   : > { %v3293_v52 = vpop.f32.mrb[0].mxu1 }
 0x2ed   : > { %v543_v53 = vpop.f32.mrb[1].mxu1  ;;  %v552_v63 = vadd.f32 %v3293_v52, %v488_v58 }
 0x2ee   : > { %v544_v56 = vadd.f32 %v543_v53, %v486_v51  ;;  %v3294_v57 = vpop.f32.mrb[2].mxu1  ;;  %v3061_v51 = vld [vmem:[%s4560_s1 + $0x20] sm:$0xff]  ;;  %v3063_v53 = vld [vmem:[%s4560_s1 + $0x30] sm:$0xff] }
 0x2ef   : > { %v546_v59 = vpop.f32.mrb[3].mxu1  ;;  %v555_v60 = vadd.f32 %v3294_v57, %v489_v54  ;;  %v564_v2 = vsel %vm373_vm0, %v552_v63, -inf }
 0x2f0   : > { %v547_v61 = vadd.f32 %v546_v59, %v487_v55  ;;  %v558_v62 = vsel %vm373_vm0, %v544_v56, -inf  ;;  %v3062_v55 = vld [vmem:[%s4560_s1 + $0x28] sm:$0xff] }
 0x2f1   : > { %559 = vmax.xlane.f32.xlu1 %v558_v62  ;;  %v567_v1 = vsel %vm373_vm0, %v555_v60, -inf  ;;  %v3064_v62 = vld [vmem:[%s4560_s1 + $0x38] sm:$0xff] }
 0x2f2   : > { %v561_v0 = vsel %vm373_vm0, %v547_v61, -inf }
 0x2f3   : > { %562 = vmax.xlane.f32.xlu0 %v561_v0 }
 0x2f5   : > { %568 = vmax.xlane.f32.xlu1 %v567_v1 }
 0x2f7   : > { %565 = vmax.xlane.f32.xlu0 %v564_v2 }
 0x306   : > { %606 = vrot.lane.b32.xlu1 %v3931_v44, %s3825_s18 }
 0x37e   : > { %v560_v3 = vpop.xlane.xlu1 %559 }
 0x37f   : > { %v570_v7 = vsub.f32 %v544_v56, %v560_v3 }
 0x380   : > { %v563_v4 = vpop.xlane.xlu0 %562 }
 0x381   : > { %v571_v5 = vsub.f32 %v547_v61, %v563_v4  ;;  %v574_v13 = vmul.f32 1.442695, %v570_v7 }
 0x382   : > { %v569_v6 = vpop.xlane.xlu1 %568 }
 0x383   : > { %v573_v8 = vsub.f32 %v555_v60, %v569_v6  ;;  %v576_v9 = vmul.f32 1.442695, %v571_v5 }
 0x384   : > { %v566_v10 = vpop.xlane.xlu0 %565 }
 0x385   : > { %v580_v11 = vmul.f32 1.442695, %v573_v8  ;;  %v572_v12 = vsub.f32 %v552_v63, %v566_v10 }
 0x386   : > { %v607_v23 = vpop.permute.xlu1 %606 }
 0x387   : > { %3636 = vpow2.f32 %v580_v11  ;;  %v578_v14 = vmul.f32 1.442695, %v572_v12 }
 0x388   : > { %3638 = vpow2.f32 %v576_v9 }
 0x389   : > { %3640 = vpow2.f32 %v578_v14 }
 0x38a   : > { %3642 = vpow2.f32 %v574_v13 }
 0x391   : > { %v3637_v15 = vpop.eup %3636 }
 0x392   : > { %v3639_v16 = vpop.eup %3638  ;;  %v591_v17 = vsel %vm373_vm0, %v3637_v15, 0.0 }
 0x393   : > { %v3641_v18 = vpop.eup %3640  ;;  %592 = vadd.xlane.f32.xlu1 %v591_v17  ;;  %v585_v21 = vsel %vm373_vm0, %v3639_v16, 0.0 }
 0x394   : > { %v588_v19 = vsel %vm373_vm0, %v3641_v18, 0.0  ;;  %v3643_v20 = vpop.eup %3642 }
 0x395   : > { %589 = vadd.xlane.f32.xlu0 %v588_v19  ;;  %v582_v22 = vsel %vm373_vm0, %v3643_v20, 0.0 }
 0x397   : > { %586 = vadd.xlane.f32.xlu1 %v585_v21 }
 0x399   : > { %583 = vadd.xlane.f32.xlu0 %v582_v22 }
 0x3a8   : > { %674 = vrot.lane.b32.xlu1 %v3933_v46, %s3826_s20 }
 0x3ac   : > { %676 = vrot.lane.b32.xlu1 %v3931_v44, %s3826_s20 }
 0x3af   : > { %604 = vrot.lane.b32.xlu0 %v3933_v46, %s3825_s18 }
 0x3b0   : > { %672 = vrot.lane.b32.xlu1 %v3931_v44, %s3827_s21 }
 0x3b3   : > { %670 = vrot.lane.b32.xlu0 %v3933_v46, %s3827_s21 }
 0x420   : > { %v593_v24 = vpop.xlane.xlu1 %592 }
 0x422   : > { %v590_v25 = vpop.xlane.xlu0 %589 }
 0x423   : > { %3644 = vrcp.f32 %v590_v25 }
 0x424   : > { %v587_v26 = vpop.xlane.xlu1 %586 }
 0x425   : > { %3646 = vrcp.f32 %v587_v26 }
 0x426   : > { %3648 = vrcp.f32 %v593_v24  ;;  %v584_v27 = vpop.xlane.xlu0 %583 }
 0x427   : > { %3650 = vrcp.f32 %v584_v27 }
 0x428   : > { %v675_v32 = vpop.permute.xlu1 %674 }
 0x429   : > { %v685_v41 = vsel %vm496_vm1, %v675_v32, 0 }
 0x42a   : > { %v605_v28 = vpop.permute.xlu0 %604 }
 0x42b   : > { %3295 = vmatprep.subr.bf16.mxu0 %v605_v28 }
 0x42c   : > { %3296 = vmatpush3.bf16.msra.mxu0 %v605_v28  ;;  %v677_v42 = vpop.permute.xlu1 %676 }
 0x42d   : > { %3297 = vmatprep.subr.bf16.mxu0 %v607_v23  ;;  %v3645_v29 = vpop.eup %3644  ;;  %v688_v43 = vsel %vm496_vm1, %v677_v42, 0 }
 0x42e   : > { %v600_v34 = vmul.f32 %v3645_v29, %v3641_v18  ;;  %v671_v40 = vpop.permute.xlu0 %670 }
 0x42f   : > { %v3647_v30 = vpop.eup %3646 }
 0x430   : > { %v3649_v31 = vpop.eup %3648  ;;  %3298 = vmatpush3.bf16.msra.mxu0 %v607_v23  ;;  %v599_v36 = vmul.f32 %v3647_v30, %v3639_v16  ;;  %v673_v45 = vpop.permute.xlu1 %672 }
 0x431   : > { %v3651_v33 = vpop.eup %3650  ;;  %3505 = vmatprep.subr.msk.bf16.mxu0 %vm496_vm1, %v675_v32  ;;  %v601_v37 = vmul.f32 %v3649_v31, %v3637_v15 }
 0x432   : > { %v598_v35 = vmul.f32 %v3651_v33, %v3643_v20 }
 0x433   : > { %v603_v39 = vpack.c.bf16 %v601_v37, %v600_v34 }
 0x434   : > { %v602_v38 = vpack.c.bf16 %v599_v36, %v598_v35 }
 0x436   : > { %3299 = vmatprep.mubr.msk.bf16.mxu0 %vm373_vm0, %v602_v38 }
 0x437   : > { %3300 = vmatmul.mubr.msk.bf16.vlgmr.msra.gmra.mrb[4].mxu0 %vm373_vm0, %v603_v39 }
 0x438   : > { %3307 = vmatprep.mubr.msk.bf16.mxu0 %vm496_vm1, %v671_v40 }
 0x439   : > { %3304 = vmatpush3.bf16.xpose.msra.mxu0 %v685_v41 }
 0x43a   : > { %3506 = vmatprep.subr.msk.bf16.mxu0 %vm496_vm1, %v677_v42 }
 0x441   : > { %3306 = vmatpush3.bf16.xpose.msra.mxu0 %v688_v43 }
 0x448   : > { %3308 = vmatmul.mubr.msk.bf16.vlgmr.msra.gmra.mrb[8].mxu0 %vm496_vm1, %v673_v45 }
 0x50a   : > { %v3987_v47 = vpop.f32.mrb[4].mxu0 }
 0x50b   : > { %v3989_v48 = vpop.f32.mrb[5].mxu0 }
 0x50c   : > { %v3991_v49 = vpop.f32.mrb[6].mxu0 }
 0x50d   : > { %v3993_v50 = vpop.f32.mrb[7].mxu0 }
 0x51b   : > { %v3309_v52 = vpop.f32.mrb[8].mxu0 }
 0x51c   : > { %v724_v54 = vpop.f32.mrb[9].mxu0  ;;  %v733_v59 = vadd.f32 %v3309_v52, %v3063_v53 }
 0x51d   : > { %v725_v56 = vadd.f32 %v3061_v51, %v724_v54  ;;  %v3310_v57 = vpop.f32.mrb[10].mxu0 }
 0x51e   : > { %v727_v58 = vpop.f32.mrb[11].mxu0  ;;  %v736_v0 = vadd.f32 %v3310_v57, %v3064_v62  ;;  %v745_v1 = vsel %vm373_vm0, %v733_v59, -inf  ;;  %v3069_v57 = vld [vmem:[%s4560_s1 + $0x40] sm:$0xff] }
 0x51f   : > { %v728_v60 = vadd.f32 %v3062_v55, %v727_v58  ;;  %v739_v61 = vsel %vm373_vm0, %v725_v56, -inf }
 0x520   : > { %740 = vmax.xlane.f32.xlu0 %v739_v61  ;;  %v748_v2 = vsel %vm373_vm0, %v736_v0, -inf  ;;  %v3070_v61 = vld [vmem:[%s4560_s1 + $0x48] sm:$0xff] }
 0x521   : > { %v742_v63 = vsel %vm373_vm0, %v728_v60, -inf }
 0x522   : > { %743 = vmax.xlane.f32.xlu1 %v742_v63 }
 0x524   : > { %746 = vmax.xlane.f32.xlu0 %v745_v1 }
 0x528   : > { %749 = vmax.xlane.f32.xlu0 %v748_v2 }
 0x533   : > { %787 = vrot.lane.b32.xlu1 %v3931_v44, %s3828_s11 }
 0x5ad   : > { %v741_v3 = vpop.xlane.xlu0 %740 }
 0x5ae   : > { %v751_v4 = vsub.f32 %v725_v56, %v741_v3 }
 0x5af   : > { %v744_v5 = vpop.xlane.xlu1 %743 }
 0x5b0   : > { %v755_v8 = vmul.f32 1.442695, %v751_v4  ;;  %v752_v9 = vsub.f32 %v728_v60, %v744_v5  ;;  %v3072_v4 = vld [vmem:[%s4560_s1 + $0x58] sm:$0xff] }
 0x5b1   : > { %v747_v6 = vpop.xlane.xlu0 %746 }
 0x5b2   : > { %v753_v7 = vsub.f32 %v733_v59, %v747_v6  ;;  %v757_v13 = vmul.f32 1.442695, %v752_v9  ;;  %v3071_v59 = vld [vmem:[%s4560_s1 + $0x50] sm:$0xff] }
 0x5b3   : > { %v788_v23 = vpop.permute.xlu1 %787 }
 0x5b4   : > { %v759_v10 = vmul.f32 1.442695, %v753_v7 }
 0x5b5   : > { %v750_v11 = vpop.xlane.xlu0 %749 }
 0x5b6   : > { %3652 = vpow2.f32 %v759_v10  ;;  %v754_v12 = vsub.f32 %v736_v0, %v750_v11 }
 0x5b7   : > { %3654 = vpow2.f32 %v755_v8 }
 0x5b8   : > { %v761_v14 = vmul.f32 1.442695, %v754_v12 }
 0x5ba   : > { %3656 = vpow2.f32 %v761_v14 }
 0x5bb   : > { %3658 = vpow2.f32 %v757_v13 }
 0x5c0   : > { %v3653_v15 = vpop.eup %3652 }
 0x5c1   : > { %v769_v16 = vsel %vm373_vm0, %v3653_v15, 0.0  ;;  %v3655_v17 = vpop.eup %3654 }
 0x5c2   : > { %770 = vadd.xlane.f32.xlu0 %v769_v16  ;;  %v763_v19 = vsel %vm373_vm0, %v3655_v17, 0.0 }
 0x5c4   : > { %v3657_v18 = vpop.eup %3656 }
 0x5c5   : > { %v772_v20 = vsel %vm373_vm0, %v3657_v18, 0.0  ;;  %v3659_v21 = vpop.eup %3658 }
 0x5c6   : > { %764 = vadd.xlane.f32.xlu0 %v763_v19  ;;  %773 = vadd.xlane.f32.xlu1 %v772_v20  ;;  %v766_v22 = vsel %vm373_vm0, %v3659_v21, 0.0 }
 0x5ca   : > { %767 = vadd.xlane.f32.xlu1 %v766_v22 }
 0x5db   : > { %855 = vrot.lane.b32.xlu1 %v3933_v46, %s3829_s12 }
 0x5dc   : > { %785 = vrot.lane.b32.xlu0 %v3933_v46, %s3828_s11 }
 0x5df   : > { %857 = vrot.lane.b32.xlu1 %v3931_v44, %s3829_s12 }
 0x5e0   : > { %851 = vrot.lane.b32.xlu0 %v3933_v46, %s3830_s14 }
 0x5e3   : > { %853 = vrot.lane.b32.xlu1 %v3931_v44, %s3830_s14 }
 0x64f   : > { %v771_v24 = vpop.xlane.xlu0 %770 }
 0x653   : > { %v774_v25 = vpop.xlane.xlu1 %773  ;;  %v765_v26 = vpop.xlane.xlu0 %764 }
 0x654   : > { %3660 = vrcp.f32 %v774_v25 }
 0x655   : > { %3662 = vrcp.f32 %v765_v26 }
 0x656   : > { %3664 = vrcp.f32 %v771_v24 }
 0x657   : > { %v768_v27 = vpop.xlane.xlu1 %767  ;;  %v786_v28 = vpop.permute.xlu0 %785 }
 0x658   : > { %3666 = vrcp.f32 %v768_v27  ;;  %3311 = vmatprep.subr.bf16.mxu1 %v786_v28 }
 0x659   : > { %3312 = vmatpush3.bf16.msra.mxu1 %v786_v28 }
 0x65a   : > { %3313 = vmatprep.subr.bf16.mxu1 %v788_v23 }
 0x65b   : > { %v856_v29 = vpop.permute.xlu1 %855  ;;  %v852_v40 = vpop.permute.xlu0 %851 }
 0x65c   : > { %v866_v41 = vsel %vm496_vm1, %v856_v29, 0 }
 0x65d   : > { %3314 = vmatpush3.bf16.msra.mxu1 %v788_v23 }
 0x65e   : > { %3507 = vmatprep.subr.msk.bf16.mxu1 %vm496_vm1, %v856_v29  ;;  %v3661_v30 = vpop.eup %3660 }
 0x65f   : > { %v3663_v31 = vpop.eup %3662  ;;  %v782_v34 = vmul.f32 %v3661_v30, %v3657_v18  ;;  %v858_v42 = vpop.permute.xlu1 %857 }
 0x660   : > { %v3665_v32 = vpop.eup %3664  ;;  %v779_v35 = vmul.f32 %v3663_v31, %v3655_v17  ;;  %v869_v43 = vsel %vm496_vm1, %v858_v42, 0 }
 0x661   : > { %v781_v37 = vmul.f32 %v3665_v32, %v3653_v15 }
 0x662   : > { %v3667_v33 = vpop.eup %3666 }
 0x663   : > { %v780_v36 = vmul.f32 %v3667_v33, %v3659_v21  ;;  %v784_v39 = vpack.c.bf16 %v782_v34, %v781_v37  ;;  %v854_v45 = vpop.permute.xlu1 %853 }
 0x665   : > { %v783_v38 = vpack.c.bf16 %v780_v36, %v779_v35 }
 0x667   : > { %3315 = vmatprep.mubr.msk.bf16.mxu1 %vm373_vm0, %v783_v38 }
 0x668   : > { %3316 = vmatmul.mubr.msk.bf16.vlgmr.msra.gmra.mrb[4].mxu1 %vm373_vm0, %v784_v39 }
 0x669   : > { %3320 = vmatpush3.bf16.xpose.msra.mxu1 %v866_v41  ;;  %3323 = vmatprep.mubr.msk.bf16.mxu1 %vm496_vm1, %v852_v40 }
 0x66a   : > { %3508 = vmatprep.subr.msk.bf16.mxu1 %vm496_vm1, %v858_v42 }
 0x671   : > { %3322 = vmatpush3.bf16.xpose.msra.mxu1 %v869_v43 }
 0x678   : > { %3324 = vmatmul.mubr.msk.bf16.vlgmr.msra.gmra.mrb[8].mxu1 %vm496_vm1, %v854_v45 }
 0x73b   : > { %v4035_v51 = vpop.f32.mrb[4].mxu1 }
 0x73c   : > { %v4037_v52 = vpop.f32.mrb[5].mxu1 }
 0x73d   : > { %v4039_v53 = vpop.f32.mrb[6].mxu1 }
 0x73e   : > { %v3551_v54 = vpack.i.bf16 %v4039_v53, %v4035_v51  ;;  %v4043_v55 = vpop.f32.mrb[7].mxu1 }
 0x73f   : > { %v3546_v56 = vpack.i.bf16 %v4043_v55, %v4037_v52 }
 0x74b   : > { %v3325_v58 = vpop.f32.mrb[8].mxu1 }
 0x74c   : > { %v905_v60 = vpop.f32.mrb[9].mxu1  ;;  %v914_v1 = vadd.f32 %v3325_v58, %v3071_v59 }
 0x74d   : > { %v906_v62 = vadd.f32 %v3069_v57, %v905_v60  ;;  %v3326_v63 = vpop.f32.mrb[10].mxu1 }
 0x74e   : > { %v908_v0 = vpop.f32.mrb[11].mxu1  ;;  %v917_v6 = vadd.f32 %v3326_v63, %v3072_v4  ;;  %v926_v7 = vsel %vm373_vm0, %v914_v1, -inf }
 0x74f   : > { %v909_v2 = vadd.f32 %v3070_v61, %v908_v0  ;;  %v920_v3 = vsel %vm373_vm0, %v906_v62, -inf }
 0x750   : > { %921 = vmax.xlane.f32.xlu0 %v920_v3  ;;  %v929_v8 = vsel %vm373_vm0, %v917_v6, -inf }
 0x751   : > { %v923_v5 = vsel %vm373_vm0, %v909_v2, -inf }
 0x752   : > { %924 = vmax.xlane.f32.xlu1 %v923_v5  ;;  %v3077_v5 = vld [vmem:[%s4560_s1 + $0x60] sm:$0xff] }
 0x754   : > { %927 = vmax.xlane.f32.xlu0 %v926_v7  ;;  %v3079_v7 = vld [vmem:[%s4560_s1 + $0x70] sm:$0xff] }
 0x758   : > { %930 = vmax.xlane.f32.xlu0 %v929_v8 }
 0x763   : > { %968 = vrot.lane.b32.xlu1 %v3931_v44, %s3831_s30 }
 0x7dd   : > { %v922_v9 = vpop.xlane.xlu0 %921 }
 0x7de   : > { %v932_v10 = vsub.f32 %v906_v62, %v922_v9  ;;  %v3078_v9 = vld [vmem:[%s4560_s1 + $0x68] sm:$0xff] }
 0x7df   : > { %v925_v11 = vpop.xlane.xlu1 %924 }
 0x7e0   : > { %v936_v14 = vmul.f32 1.442695, %v932_v10  ;;  %v933_v15 = vsub.f32 %v909_v2, %v925_v11 }
 0x7e1   : > { %v928_v12 = vpop.xlane.xlu0 %927 }
 0x7e2   : > { %v934_v13 = vsub.f32 %v914_v1, %v928_v12  ;;  %v938_v19 = vmul.f32 1.442695, %v933_v15 }
 0x7e3   : > { %v969_v29 = vpop.permute.xlu1 %968 }
 0x7e4   : > { %v940_v16 = vmul.f32 1.442695, %v934_v13 }
 0x7e5   : > { %v931_v17 = vpop.xlane.xlu0 %930 }
 0x7e6   : > { %3668 = vpow2.f32 %v940_v16  ;;  %v935_v18 = vsub.f32 %v917_v6, %v931_v17  ;;  %v3080_v16 = vld [vmem:[%s4560_s1 + $0x78] sm:$0xff] }
 0x7e7   : > { %3670 = vpow2.f32 %v936_v14 }
 0x7e8   : > { %v942_v20 = vmul.f32 1.442695, %v935_v18 }
 0x7ea   : > { %3672 = vpow2.f32 %v942_v20 }
 0x7eb   : > { %3674 = vpow2.f32 %v938_v19 }
 0x7f0   : > { %v3669_v21 = vpop.eup %3668 }
 0x7f1   : > { %v950_v22 = vsel %vm373_vm0, %v3669_v21, 0.0  ;;  %v3671_v23 = vpop.eup %3670 }
 0x7f2   : > { %951 = vadd.xlane.f32.xlu0 %v950_v22  ;;  %v944_v25 = vsel %vm373_vm0, %v3671_v23, 0.0 }
 0x7f4   : > { %v3673_v24 = vpop.eup %3672 }
 0x7f5   : > { %v953_v26 = vsel %vm373_vm0, %v3673_v24, 0.0  ;;  %v3675_v27 = vpop.eup %3674 }
 0x7f6   : > { %945 = vadd.xlane.f32.xlu0 %v944_v25  ;;  %954 = vadd.xlane.f32.xlu1 %v953_v26  ;;  %v947_v28 = vsel %vm373_vm0, %v3675_v27, 0.0 }
 0x7fa   : > { %948 = vadd.xlane.f32.xlu1 %v947_v28 }
 0x80b   : > { %1036 = vrot.lane.b32.xlu1 %v3933_v46, %s3832_s17 }
 0x80c   : > { %966 = vrot.lane.b32.xlu0 %v3933_v46, %s3831_s30 }
 0x80f   : > { %1038 = vrot.lane.b32.xlu1 %v3931_v44, %s3832_s17 }
 0x810   : > { %1032 = vrot.lane.b32.xlu0 %v3933_v46, %s3833_s22 }
 0x813   : > { %1034 = vrot.lane.b32.xlu1 %v3931_v44, %s3833_s22 }
 0x87f   : > { %v952_v30 = vpop.xlane.xlu0 %951 }
 0x883   : > { %v955_v31 = vpop.xlane.xlu1 %954  ;;  %v946_v32 = vpop.xlane.xlu0 %945 }
 0x884   : > { %3676 = vrcp.f32 %v955_v31 }
 0x885   : > { %3678 = vrcp.f32 %v946_v32 }
 0x886   : > { %3680 = vrcp.f32 %v952_v30 }
 0x887   : > { %v949_v33 = vpop.xlane.xlu1 %948  ;;  %v967_v34 = vpop.permute.xlu0 %966 }
 0x888   : > { %3682 = vrcp.f32 %v949_v33  ;;  %3327 = vmatprep.subr.bf16.mxu0 %v967_v34 }
 0x889   : > { %3328 = vmatpush3.bf16.msra.mxu0 %v967_v34 }
 0x88a   : > { %3329 = vmatprep.subr.bf16.mxu0 %v969_v29 }
 0x88b   : > { %v1037_v35 = vpop.permute.xlu1 %1036  ;;  %v1033_v58 = vpop.permute.xlu0 %1032 }
 0x88c   : > { %v1047_v59 = vsel %vm496_vm1, %v1037_v35, 0 }
 0x88d   : > { %3330 = vmatpush3.bf16.msra.mxu0 %v969_v29 }
 0x88e   : > { %3509 = vmatprep.subr.msk.bf16.mxu0 %vm496_vm1, %v1037_v35  ;;  %v3677_v36 = vpop.eup %3676 }
 0x88f   : > { %v3679_v37 = vpop.eup %3678  ;;  %v963_v40 = vmul.f32 %v3677_v36, %v3673_v24  ;;  %v1039_v60 = vpop.permute.xlu1 %1038 }
 0x890   : > { %v3681_v38 = vpop.eup %3680  ;;  %v960_v41 = vmul.f32 %v3679_v37, %v3671_v23  ;;  %v1050_v61 = vsel %vm496_vm1, %v1039_v60, 0 }
 0x891   : > { %v962_v43 = vmul.f32 %v3681_v38, %v3669_v21 }
 0x892   : > { %v3683_v39 = vpop.eup %3682 }
 0x893   : > { %v961_v42 = vmul.f32 %v3683_v39, %v3675_v27  ;;  %v965_v57 = vpack.c.bf16 %v963_v40, %v962_v43  ;;  %v1035_v62 = vpop.permute.xlu1 %1034 }
 0x895   : > { %v964_v45 = vpack.c.bf16 %v961_v42, %v960_v41 }
 0x897   : > { %3331 = vmatprep.mubr.msk.bf16.mxu0 %vm373_vm0, %v964_v45 }
 0x898   : > { %3332 = vmatmul.mubr.msk.bf16.vlgmr.msra.gmra.mrb[12].mxu0 %vm373_vm0, %v965_v57 }
 0x899   : > { %3336 = vmatpush3.bf16.xpose.msra.mxu0 %v1047_v59  ;;  %3339 = vmatprep.mubr.msk.bf16.mxu0 %vm496_vm1, %v1033_v58 }
 0x89a   : > { %3510 = vmatprep.subr.msk.bf16.mxu0 %vm496_vm1, %v1039_v60 }
 0x8a1   : > { %3338 = vmatpush3.bf16.xpose.msra.mxu0 %v1050_v61  ;;  %v3608_v61 = vld [vmem:[%s4564_s5] sm:$0xff]  }
 0x8a8   : > { %3340 = vmatmul.mubr.msk.bf16.vlgmr.msra.gmra.mrb[16].mxu0 %vm496_vm1, %v1035_v62  ;;  %v3609_v62 = vld [vmem:[%s4564_s5 + $0x8] sm:$0xff]  }
 0x96b   : > { %v3333_v63 = vpop.f32.mrb[12].mxu0 }
 0x96c   : > { %v1012_v0 = vpop.f32.mrb[13].mxu0 }
 0x96d   : > { %v3334_v1 = vpop.f32.mrb[14].mxu0 }
 0x96e   : > { %v3561_v2 = vpack.i.bf16 %v3334_v1, %v3333_v63  ;;  %v1015_v3 = vpop.f32.mrb[15].mxu0 }
 0x96f   : > { %v3556_v4 = vpack.i.bf16 %v1015_v3, %v1012_v0 }
 0x97b   : > { %v3341_v6 = vpop.f32.mrb[16].mxu0 }
 0x97c   : > { %v1086_v8 = vpop.f32.mrb[17].mxu0  ;;  %v1095_v13 = vadd.f32 %v3341_v6, %v3079_v7 }
 0x97d   : > { %v1087_v10 = vadd.f32 %v3077_v5, %v1086_v8  ;;  %v3342_v11 = vpop.f32.mrb[18].mxu0 }
 0x97e   : > { %v1089_v12 = vpop.f32.mrb[19].mxu0  ;;  %v1098_v18 = vadd.f32 %v3342_v11, %v3080_v16  ;;  %v1107_v19 = vsel %vm373_vm0, %v1095_v13, -inf }
 0x97f   : > { %v1090_v14 = vadd.f32 %v3078_v9, %v1089_v12  ;;  %v1101_v15 = vsel %vm373_vm0, %v1087_v10, -inf }
 0x980   : > { %1102 = vmax.xlane.f32.xlu0 %v1101_v15  ;;  %v1110_v20 = vsel %vm373_vm0, %v1098_v18, -inf }
 0x981   : > { %v1104_v17 = vsel %vm373_vm0, %v1090_v14, -inf }
 0x982   : > { %1105 = vmax.xlane.f32.xlu1 %v1104_v17 }
 0x984   : > { %1108 = vmax.xlane.f32.xlu0 %v1107_v19 }
 0x988   : > { %1111 = vmax.xlane.f32.xlu0 %v1110_v20 }
 0xa0d   : > { %v1103_v21 = vpop.xlane.xlu0 %1102 }
 0xa0e   : > { %v1113_v22 = vsub.f32 %v1087_v10, %v1103_v21 }
 0xa0f   : > { %v1106_v23 = vpop.xlane.xlu1 %1105 }
 0xa10   : > { %v1117_v26 = vmul.f32 1.442695, %v1113_v22  ;;  %v1114_v27 = vsub.f32 %v1090_v14, %v1106_v23 }
 0xa11   : > { %v1109_v24 = vpop.xlane.xlu0 %1108 }
 0xa12   : > { %v1115_v25 = vsub.f32 %v1095_v13, %v1109_v24  ;;  %v1119_v31 = vmul.f32 1.442695, %v1114_v27 }
 0xa14   : > { %v1121_v28 = vmul.f32 1.442695, %v1115_v25 }
 0xa15   : > { %v1112_v29 = vpop.xlane.xlu0 %1111 }
 0xa16   : > { %3684 = vpow2.f32 %v1121_v28  ;;  %v1116_v30 = vsub.f32 %v1098_v18, %v1112_v29 }
 0xa17   : > { %3686 = vpow2.f32 %v1117_v26 }
 0xa18   : > { %v1123_v32 = vmul.f32 1.442695, %v1116_v30 }
 0xa1a   : > { %3688 = vpow2.f32 %v1123_v32 }
 0xa1b   : > { %3690 = vpow2.f32 %v1119_v31 }
 0xa20   : > { %v3685_v33 = vpop.eup %3684 }
 0xa21   : > { %v1131_v34 = vsel %vm373_vm0, %v3685_v33, 0.0  ;;  %v3687_v35 = vpop.eup %3686 }
 0xa22   : > { %1132 = vadd.xlane.f32.xlu0 %v1131_v34  ;;  %v1125_v37 = vsel %vm373_vm0, %v3687_v35, 0.0 }
 0xa24   : > { %v3689_v36 = vpop.eup %3688 }
 0xa25   : > { %v1134_v38 = vsel %vm373_vm0, %v3689_v36, 0.0  ;;  %v3691_v39 = vpop.eup %3690 }
 0xa26   : > { %1126 = vadd.xlane.f32.xlu0 %v1125_v37  ;;  %1135 = vadd.xlane.f32.xlu1 %v1134_v38  ;;  %v1128_v40 = vsel %vm373_vm0, %v3691_v39, 0.0  ;;  %v3797_v37 = vld [vmem:[%s3910_s19] sm:$0xff] }
 0xa2a   : > { %1129 = vadd.xlane.f32.xlu1 %v1128_v40 }
 0xa3b   : > { %1149 = vrot.lane.b32.xlu1 %v3931_v44, %s4577_s16 }
 0xa3c   : > { %1147 = vrot.lane.b32.xlu0 %v3933_v46, %s4577_s16  ;;  %s4579_s16 = smov 40  }
 0xa3f   : > { %3547 = vrot.lane.b32.xlu1 %v3546_v56, %s4575_s24 }
 0xa40   : > { %3557 = vrot.lane.b32.xlu0 %v3556_v4, %s4571_s25 }
 0xa43   : > { %3552 = vrot.lane.b32.xlu1 %v3551_v54, %s4575_s24 }
 0xa47   : > { %3562 = vrot.lane.b32.xlu1 %v3561_v2, %s4571_s25  ;;  %s4573_s25 = smov 24  }
 0xaaf   : > { %v1133_v44 = vpop.xlane.xlu0 %1132 }
 0xab3   : > { %v1136_v41 = vpop.xlane.xlu1 %1135  ;;  %v1127_v42 = vpop.xlane.xlu0 %1126 }
 0xab4   : > { %3692 = vrcp.f32 %v1136_v41 }
 0xab5   : > { %3694 = vrcp.f32 %v1127_v42 }
 0xab6   : > { %3696 = vrcp.f32 %v1133_v44  ;;  %v3798_v44 = vld [vmem:[%s3910_s19 + $0x8] sm:$0xff] }
 0xab7   : > { %v1130_v46 = vpop.xlane.xlu1 %1129  ;;  %v1148_v43 = vpop.permute.xlu0 %1147 }
 0xab8   : > { %3698 = vrcp.f32 %v1130_v46  ;;  %3343 = vmatprep.subr.bf16.mxu1 %v1148_v43  ;;  %v3799_v46 = vld [vmem:[%s3910_s19 + $0x18] sm:$0xff] }
 0xab9   : > { %3344 = vmatpush3.bf16.msra.mxu1 %v1148_v43 }
 0xabb   : > { %v1150_v52 = vpop.permute.xlu1 %1149  ;;  %v3558_v8 = vpop.permute.xlu0 %3557 }
 0xabc   : > { %3345 = vmatprep.subr.bf16.mxu1 %v1150_v52  ;;  %v3560_v15 = vunpack.i.h.bf16 %v3558_v8  ;;  %v3559_v16 = vunpack.i.l.bf16 %v3558_v8 }
 0xabd   : > { %3346 = vmatpush3.bf16.msra.mxu1 %v1150_v52 }
 0xabe   : > { %v3693_v55 = vpop.eup %3692  ;;  %3351 = vmatprep.subr.bf16.mxu1 %v3608_v61 }
 0xabf   : > { %v3695_v56 = vpop.eup %3694  ;;  %v1144_v54 = vmul.f32 %v3693_v55, %v3689_v36  ;;  %v3548_v5 = vpop.permute.xlu1 %3547 }
 0xac0   : > { %v3697_v51 = vpop.eup %3696  ;;  %v1141_v45 = vmul.f32 %v3695_v56, %v3687_v35  ;;  %v3550_v9 = vunpack.i.h.bf16 %v3548_v5  ;;  %v3549_v10 = vunpack.i.l.bf16 %v3548_v5  ;;  %v3796_v35 = vld [vmem:[%s3910_s19 + $0x10] sm:$0xff] }
 0xac1   : > { %v1143_v58 = vmul.f32 %v3697_v51, %v3685_v33 }
 0xac2   : > { %v3699_v53 = vpop.eup %3698  ;;  %v1257_v17 = vsel %vm496_vm1, %v3993_v50, %v3550_v9  ;;  %v1256_v18 = vsel %vm496_vm1, %v3989_v48, %v3549_v10 }
 0xac3   : > { %v1142_v57 = vmul.f32 %v3699_v53, %v3691_v39  ;;  %v1146_v60 = vpack.c.bf16 %v1144_v54, %v1143_v58  ;;  %v3553_v6 = vpop.permute.xlu1 %3552  ;;  %v3611_v58 = vld [vmem:[%s4565_s6 + $0x8] sm:$0xff]  }
 0xac4   : > { %v3555_v11 = vunpack.i.h.bf16 %v3553_v6  ;;  %v3554_v12 = vunpack.i.l.bf16 %v3553_v6 }
 0xac5   : > { %v1145_v59 = vpack.c.bf16 %v1142_v57, %v1141_v45  ;;  %v3610_v57 = vld [vmem:[%s4565_s6] sm:$0xff]  }
 0xac6   : > { %v1259_v20 = vsel %vm496_vm1, %v3991_v49, %v3555_v11  ;;  %v1258_v21 = vsel %vm496_vm1, %v3987_v47, %v3554_v12  ;;  %v1261_v49 = vsel %vm1260_vm2, %v1256_v18, %v3559_v16  ;;  %v1262_v47 = vsel %vm1260_vm2, %v1257_v17, %v3560_v15  ;;  %3359 = vmatprep.subr.bf16.mxu0 %v3610_v57  ;;  %v3089_v12 = vld [vmem:[%s4562_s3] ss:$0 sm:$0xff] }
 0xac7   : > { %3347 = vmatprep.mubr.msk.bf16.mxu1 %vm373_vm0, %v1145_v59  ;;  %v3563_v7 = vpop.permute.xlu1 %3562  ;;  %3360 = vmatpush3.bf16.msra.mxu0 %v3610_v57  ;;  %v3612_v59 = vld [vmem:[%s4566_s7] sm:$0xff]  }
 0xac8   : > { %3348 = vmatmul.mubr.msk.bf16.vlgmr.msra.gmra.mrb[12].mxu1 %vm373_vm0, %v1146_v60  ;;  %v3565_v13 = vunpack.i.h.bf16 %v3563_v7  ;;  %v3564_v14 = vunpack.i.l.bf16 %v3563_v7  ;;  %3361 = vmatprep.subr.bf16.mxu0 %v3611_v58  ;;  %v3613_v60 = vld [vmem:[%s4566_s7 + $0x8] sm:$0xff]  }
 0xac9   : > { %3352 = vmatpush3.bf16.msra.mxu1 %v3608_v61 }
 0xaca   : > { %3353 = vmatprep.subr.bf16.mxu1 %v3609_v62  ;;  %v1263_v25 = vsel %vm1260_vm2, %v1258_v21, %v3564_v14  ;;  %v1264_v26 = vsel %vm1260_vm2, %v1259_v20, %v3565_v13 }
 0xacb   : > { %3362 = vmatpush3.bf16.msra.mxu0 %v3611_v58 }
 0xacd   : > { %3354 = vmatpush3.bf16.msra.mxu1 %v3609_v62 }
 0xace   : > { %3367 = vmatprep.subr.bf16.mxu1 %v3612_v59 }
 0xb9b   : > { %v3349_v63 = vpop.f32.mrb[12].mxu1 }
 0xb9c   : > { %v1193_v0 = vpop.f32.mrb[13].mxu1 }
 0xb9d   : > { %v3350_v1 = vpop.f32.mrb[14].mxu1 }
 0xb9e   : > { %v3571_v2 = vpack.i.bf16 %v3350_v1, %v3349_v63  ;;  %v1196_v3 = vpop.f32.mrb[15].mxu1 }
 0xb9f   : > { %v3566_v4 = vpack.i.bf16 %v1196_v3, %v1193_v0 }
 0xba0   : > { %3572 = vrot.lane.b32.xlu1 %v3571_v2, %s4573_s25 }
 0xba1   : > { %3567 = vrot.lane.b32.xlu0 %v3566_v4, %s4573_s25 }
 0xc12   : > { %v3573_v19 = vpop.permute.xlu1 %3572 }
 0xc13   : > { %v3575_v22 = vunpack.i.h.bf16 %v3573_v19  ;;  %v3574_v23 = vunpack.i.l.bf16 %v3573_v19  ;;  %v3568_v24 = vpop.permute.xlu0 %3567 }
 0xc14   : > { %v3570_v50 = vunpack.i.h.bf16 %v3568_v24  ;;  %v3569_v27 = vunpack.i.l.bf16 %v3568_v24  ;;  %v3614_v24 = vld [vmem:[%s4566_s7 + $0x10] sm:$0xff]  }
 0xc15   : > { %v1269_v48 = vsel %vm1265_vm3, %v1264_v26, %v3575_v22  ;;  %v1268_v28 = vsel %vm1265_vm3, %v1263_v25, %v3574_v23  ;;  %v3615_v25 = vld [vmem:[%s4566_s7 + $0x18] sm:$0xff]  }
 0xc16   : > { %v1275_v29 = vpack.c.bf16 %v1269_v48, %v1268_v28  ;;  %v1266_v30 = vsel %vm1265_vm3, %v1261_v49, %v3569_v27  ;;  %v1267_v31 = vsel %vm1265_vm3, %v1262_v47, %v3570_v50 }
 0xc17   : > { %v1274_v32 = vpack.c.bf16 %v1267_v31, %v1266_v30 }
 0xc19   : > { %3355 = vmatprep.mubr.msk.bf16.mxu1 %vm373_vm0, %v1274_v32 }
 0xc1a   : > { %3356 = vmatmul.mubr.msk.bf16.vlgmr.msra.gmra.mrb[16].mxu1 %vm373_vm0, %v1275_v29 }
 0xc1b   : > { %3368 = vmatpush3.bf16.msra.mxu1 %v3612_v59 }
 0xc1c   : > { %3369 = vmatprep.subr.bf16.mxu1 %v3613_v60 }
 0xc1f   : > { %3370 = vmatpush3.bf16.msra.mxu1 %v3613_v60 }
 0xc20   : > { %3371 = vmatprep.subr.bf16.mxu1 %v3614_v24 }
 0xc23   : > { %3372 = vmatpush3.bf16.msra.mxu1 %v3614_v24 }
 0xc24   : > { %3373 = vmatprep.subr.bf16.mxu1 %v3615_v25 }
 0xc27   : > { %3374 = vmatpush3.bf16.msra.mxu1 %v3615_v25 }
 0xced   : > { %v3357_v33 = vpop.f32.mrb[16].mxu1 }
 0xcee   : > { %v1328_v34 = vpop.f32.mrb[17].mxu1  ;;  %v4150_v36 = vadd.f32 %v3796_v35, %v3357_v33 }
 0xcef   : > { %v4153_v38 = vadd.f32 %v3797_v37, %v1328_v34  ;;  %v3358_v39 = vpop.f32.mrb[18].mxu1 }
 0xcf0   : > { %v1331_v40 = vpop.f32.mrb[19].mxu1  ;;  %v4161_v43 = vadd.f32 %v3799_v46, %v3358_v39  ;;  %v1350_v56 = vmul.f32 %v4150_v36, %v4150_v36 }
 0xcf1   : > { %v4156_v41 = vadd.f32 %v3798_v44, %v1331_v40  ;;  %v1348_v42 = vmul.f32 %v4153_v38, %v4153_v38 }
 0xcf2   : > { %v1358_v53 = vsel %vm373_vm0, %v1350_v56, 0.0  ;;  %v1351_v54 = vmul.f32 %v4161_v43, %v4161_v43  ;;  %v3616_v56 = vld [vmem:[%s4563_s4 + $0x10] sm:$0xff]  }
 0xcf3   : > { %v1352_v52 = vsel %vm373_vm0, %v1348_v42, 0.0  ;;  %v1349_v55 = vmul.f32 %v4156_v41, %v4156_v41  ;;  %3379 = vmatprep.subr.bf16.mxu0 %v3616_v56 }
 0xcf4   : > { %1353 = vadd.xlane.f32.xlu0 %v1352_v52  ;;  %v1361_v45 = vsel %vm373_vm0, %v1351_v54, 0.0 }
 0xcf5   : > { %v1355_v51 = vsel %vm373_vm0, %v1349_v55, 0.0 }
 0xcf6   : > { %1356 = vadd.xlane.f32.xlu1 %v1355_v51  ;;  %v3617_v51 = vld [vmem:[%s4563_s4 + $0x18] sm:$0xff]  }
 0xcf8   : > { %1359 = vadd.xlane.f32.xlu0 %v1358_v53 }
 0xcfc   : > { %1362 = vadd.xlane.f32.xlu0 %v1361_v45 }
 0xd81   : > { %v1354_v61 = vpop.xlane.xlu0 %1353 }
 0xd82   : > { %v1364_v62 = vmul.f32 0.03125, %v1354_v61 }
 0xd83   : > { %v1357_v63 = vpop.xlane.xlu1 %1356 }
 0xd84   : > { %v1368_v0 = vadd.f32 1e-06, %v1364_v62  ;;  %v1365_v1 = vmul.f32 0.03125, %v1357_v63 }
 0xd85   : > { %v1360_v2 = vpop.xlane.xlu0 %1359 }
 0xd86   : > { %3700 = vrsqrt.f32 %v1368_v0  ;;  %v1369_v3 = vadd.f32 1e-06, %v1365_v1  ;;  %v1366_v4 = vmul.f32 0.03125, %v1360_v2 }
 0xd88   : > { %3702 = vrsqrt.f32 %v1369_v3  ;;  %v1370_v5 = vadd.f32 1e-06, %v1366_v4 }
 0xd89   : > { %v1363_v6 = vpop.xlane.xlu0 %1362 }
 0xd8a   : > { %3704 = vrsqrt.f32 %v1370_v5  ;;  %v1367_v7 = vmul.f32 0.03125, %v1363_v6  ;;  %v3100_v5 = vld [vmem:[%s4561_s2 + $0x1] ss:$0 sm:$0xff] }
 0xd8c   : > { %v1371_v8 = vadd.f32 1e-06, %v1367_v7 }
 0xd8e   : > { %3706 = vrsqrt.f32 %v1371_v8 }
 0xd90   : > { %v3701_v9 = vpop.eup %3700 }
 0xd91   : > { %v1376_v10 = vmul.f32 %v3701_v9, %v4153_v38 }
 0xd92   : > { %v3703_v11 = vpop.eup %3702 }
 0xd93   : > { %v1377_v13 = vmul.f32 %v3703_v11, %v4156_v41  ;;  %v1384_v15 = vmul.f32 %v3089_v12, %v1376_v10 }
 0xd94   : > { %v3705_v14 = vpop.eup %3704 }
 0xd95   : > { %v1385_v16 = vmul.f32 %v3089_v12, %v1377_v13  ;;  %v1378_v17 = vmul.f32 %v3705_v14, %v4150_v36 }
 0xd97   : > { %v1392_v18 = vpack.c.bf16 %v1385_v16, %v1384_v15  ;;  %v1386_v21 = vmul.f32 %v3089_v12, %v1378_v17 }
 0xd98   : > { %v3707_v19 = vpop.eup %3706 }
 0xd99   : > { %v1379_v20 = vmul.f32 %v3707_v19, %v4161_v43  ;;  %3363 = vmatprep.mubr.msk.bf16.mxu0 %vm373_vm0, %v1392_v18 }
 0xd9b   : > { %v1387_v22 = vmul.f32 %v3089_v12, %v1379_v20 }
 0xd9d   : > { %v1393_v23 = vpack.c.bf16 %v1387_v22, %v1386_v21 }
 0xd9f   : > { %3364 = vmatmul.mubr.msk.bf16.vlgmr.msra.gmra.mrb[20].mxu0 %vm373_vm0, %v1393_v23 }
 0xda0   : > { %3380 = vmatpush3.bf16.msra.mxu0 %v3616_v56 }
 0xda1   : > { %3381 = vmatprep.subr.bf16.mxu0 %v3617_v51 }
 0xda4   : > { %3382 = vmatpush3.bf16.msra.mxu0 %v3617_v51 }
 0xe72   : > { %v3365_v26 = vpop.f32.mrb[20].mxu0 }
 0xe73   : > { %v1446_v50 = vpop.f32.mrb[21].mxu0  ;;  %v1463_v48 = vmax.f32 %v3365_v26, 0.0 }
 0xe74   : > { %v3366_v27 = vpop.f32.mrb[22].mxu0  ;;  %v1461_v47 = vmax.f32 %v1446_v50, 0.0 }
 0xe75   : > { %v1464_v28 = vmax.f32 %v3366_v27, 0.0  ;;  %v1449_v49 = vpop.f32.mrb[23].mxu0 }
 0xe76   : > { %v1462_v29 = vmax.f32 %v1449_v49, 0.0 }
 0xe77   : > { %v1474_v30 = vpack.c.bf16 %v1464_v28, %v1463_v48  ;;  %v3800_v48 = vld [vmem:[%s4560_s1] sm:$0xff] }
 0xe78   : > { %v1473_v31 = vpack.c.bf16 %v1462_v29, %v1461_v47  ;;  %v3801_v29 = vld [vmem:[%s4560_s1 + $0x18] sm:$0xff] }
 0xe7a   : > { %3375 = vmatprep.mubr.msk.bf16.mxu1 %vm1499_vm4, %v1473_v31  ;;  %v3802_v31 = vld [vmem:[%s4560_s1 + $0x8] sm:$0xff] }
 0xe7b   : > { %3376 = vmatmul.mubr.msk.bf16.vlgmr.msra.gmra.mrb[20].mxu1 %vm1499_vm4, %v1474_v30 }
 0xf4e   : > { %v3377_v32 = vpop.f32.mrb[20].mxu1 }
 0xf4f   : > { %v1540_v33 = vpop.f32.mrb[21].mxu1  ;;  %v4203_v34 = vadd.f32 %v3377_v32, %v4150_v36 }
 0xf50   : > { %v4206_v35 = vadd.f32 %v1540_v33, %v4153_v38  ;;  %v3378_v37 = vpop.f32.mrb[22].mxu1 }
 0xf51   : > { %v1543_v39 = vpop.f32.mrb[23].mxu1  ;;  %v4209_v40 = vadd.f32 %v3378_v37, %v4161_v43  ;;  %v1562_v38 = vmul.f32 %v4203_v34, %v4203_v34  ;;  %v3803_v37 = vld [vmem:[%s4560_s1 + $0x10] sm:$0xff] }
 0xf52   : > { %v4212_v44 = vadd.f32 %v1543_v39, %v4156_v41  ;;  %v1560_v42 = vmul.f32 %v4206_v35, %v4206_v35 }
 0xf53   : > { %v1563_v43 = vmul.f32 %v4209_v40, %v4209_v40  ;;  %v1570_v41 = vsel %vm373_vm0, %v1562_v38, 0.0 }
 0xf54   : > { %v1564_v46 = vsel %vm373_vm0, %v1560_v42, 0.0  ;;  %v1561_v36 = vmul.f32 %v4212_v44, %v4212_v44 }
 0xf55   : > { %1565 = vadd.xlane.f32.xlu0 %v1564_v46  ;;  %v1573_v55 = vsel %vm373_vm0, %v1563_v43, 0.0 }
 0xf56   : > { %v1567_v52 = vsel %vm373_vm0, %v1561_v36, 0.0 }
 0xf57   : > { %1568 = vadd.xlane.f32.xlu1 %v1567_v52 }
 0xf59   : > { %1571 = vadd.xlane.f32.xlu0 %v1570_v41 }
 0xf5b   : > { %1574 = vadd.xlane.f32.xlu1 %v1573_v55 }
 0xfe2   : > { %v1566_v53 = vpop.xlane.xlu0 %1565 }
 0xfe3   : > { %v1576_v54 = vmul.f32 0.03125, %v1566_v53 }
 0xfe4   : > { %v1569_v45 = vpop.xlane.xlu1 %1568 }
 0xfe5   : > { %v1580_v57 = vadd.f32 1e-06, %v1576_v54  ;;  %v1577_v58 = vmul.f32 0.03125, %v1569_v45 }
 0xfe6   : > { %v1572_v59 = vpop.xlane.xlu0 %1571 }
 0xfe7   : > { %3708 = vrsqrt.f32 %v1580_v57  ;;  %v1581_v60 = vadd.f32 1e-06, %v1577_v58  ;;  %v1578_v61 = vmul.f32 0.03125, %v1572_v59 }
 0xfe8   : > { %v1575_v62 = vpop.xlane.xlu1 %1574 }
 0xfe9   : > { %3710 = vrsqrt.f32 %v1581_v60  ;;  %v1582_v63 = vadd.f32 1e-06, %v1578_v61  ;;  %v1579_v0 = vmul.f32 0.03125, %v1575_v62 }
 0xfeb   : > { %3712 = vrsqrt.f32 %v1582_v63  ;;  %v1583_v1 = vadd.f32 1e-06, %v1579_v0 }
 0xfed   : > { %3714 = vrsqrt.f32 %v1583_v1 }
 0xff1   : > { %v3709_v2 = vpop.eup %3708 }
 0xff2   : > { %v1588_v3 = vmul.f32 %v3709_v2, %v4206_v35 }
 0xff3   : > { %v3711_v4 = vpop.eup %3710 }
 0xff4   : > { %v1589_v6 = vmul.f32 %v3711_v4, %v4212_v44  ;;  %v1596_v9 = vmul.f32 %v3100_v5, %v1588_v3 }
 0xff5   : > { %v3713_v7 = vpop.eup %3712 }
 0xff6   : > { %v1590_v8 = vmul.f32 %v3713_v7, %v4203_v34  ;;  %v1597_v10 = vmul.f32 %v3100_v5, %v1589_v6 }
 0xff7   : > { %v3715_v11 = vpop.eup %3714 }
 0xff8   : > { %v1591_v12 = vmul.f32 %v3715_v11, %v4209_v40  ;;  %v1605_v13 = vpack.c.bf16 %v1597_v10, %v1596_v9  ;;  %v1598_v14 = vmul.f32 %v3100_v5, %v1590_v8 }
 0xffa   : > { %3383 = vmatprep.mubr.msk.bf16.mxu0 %vm373_vm0, %v1605_v13  ;;  %v1599_v15 = vmul.f32 %v3100_v5, %v1591_v12 }
 0xffc   : > { %v1606_v16 = vpack.c.bf16 %v1599_v15, %v1598_v14 }
 0xffe   : > { %3384 = vmatmul.mubr.msk.bf16.vlgmr.msra.gmra.mrb[24].mxu0 %vm373_vm0, %v1606_v16 }
0x10d1   : > { %v3385_v17 = vpop.f32.mrb[24].mxu0 }
0x10d2   : > { %v1659_v18 = vpop.f32.mrb[25].mxu0 }
0x10d3   : > { %v3386_v19 = vpop.f32.mrb[26].mxu0 }
0x10d4   : > { %v4241_v20 = vpack.c.bf16 %v3386_v19, %v3385_v17  ;;  %v1662_v21 = vpop.f32.mrb[27].mxu0 }
0x10d5   : > { %v4243_v22 = vpack.c.bf16 %v1662_v21, %v1659_v18 }
0x10d6   : > { %1680 = vrot.lane.b32.xlu1 %v4241_v20, %s3824_s26 }
0x10d7   : > { %1678 = vrot.lane.b32.xlu0 %v4243_v22, %s3824_s26  ;;  %3391 = vmatprep.mubr.msk.bf16.mxu0 %vm496_vm1, %v4243_v22 }
0x1148   : > { %v1681_v25 = vpop.permute.xlu1 %1680 }
0x1149   : > { %v1679_v23 = vpop.permute.xlu0 %1678  ;;  %v1692_v26 = vsel %vm496_vm1, %v1681_v25, 0 }
0x114a   : > { %v1689_v24 = vsel %vm496_vm1, %v1679_v23, 0  ;;  %3511 = vmatprep.subr.msk.bf16.mxu0 %vm496_vm1, %v1679_v23 }
0x114b   : > { %3388 = vmatpush3.bf16.xpose.msra.mxu0 %v1689_v24 }
0x114c   : > { %3512 = vmatprep.subr.msk.bf16.mxu0 %vm496_vm1, %v1681_v25 }
0x1153   : > { %3390 = vmatpush3.bf16.xpose.msra.mxu0 %v1692_v26 }
0x115a   : > { %3392 = vmatmul.mubr.msk.bf16.vlgmr.msra.gmra.mrb[28].mxu0 %vm496_vm1, %v4241_v20 }
0x122d   : > { %v3393_v50 = vpop.f32.mrb[28].mxu0 }
0x122e   : > { %v1728_v27 = vpop.f32.mrb[29].mxu0  ;;  %v1737_v39 = vadd.f32 %v3803_v37, %v3393_v50 }
0x122f   : > { %v1729_v28 = vadd.f32 %v3800_v48, %v1728_v27  ;;  %v3394_v49 = vpop.f32.mrb[30].mxu0 }
0x1230   : > { %v1731_v47 = vpop.f32.mrb[31].mxu0  ;;  %v1740_v30 = vadd.f32 %v3801_v29, %v3394_v49  ;;  %v1749_v36 = vsel %vm373_vm0, %v1737_v39, -inf  ;;  %v3804_v29 = vld [vmem:[%s4560_s1 + $0x20] sm:$0xff] }
0x1231   : > { %v1732_v32 = vadd.f32 %v3802_v31, %v1731_v47  ;;  %v1743_v33 = vsel %vm373_vm0, %v1729_v28, -inf }
0x1232   : > { %1744 = vmax.xlane.f32.xlu1 %v1743_v33  ;;  %v1752_v46 = vsel %vm373_vm0, %v1740_v30, -inf  ;;  %v3805_v33 = vld [vmem:[%s4560_s1 + $0x30] sm:$0xff] }
0x1233   : > { %v1746_v42 = vsel %vm373_vm0, %v1732_v32, -inf }
0x1234   : > { %1747 = vmax.xlane.f32.xlu0 %v1746_v42 }
0x1236   : > { %1753 = vmax.xlane.f32.xlu1 %v1752_v46 }
0x1238   : > { %1750 = vmax.xlane.f32.xlu0 %v1749_v36 }
0x1247   : > { %1791 = vrot.lane.b32.xlu1 %v4241_v20, %s3825_s18 }
0x12bf   : > { %v1745_v38 = vpop.xlane.xlu1 %1744 }
0x12c0   : > { %v1755_v55 = vsub.f32 %v1729_v28, %v1745_v38  ;;  %v3807_v38 = vld [vmem:[%s4560_s1 + $0x38] sm:$0xff] }
0x12c1   : > { %v1748_v52 = vpop.xlane.xlu0 %1747 }
0x12c2   : > { %v1756_v43 = vsub.f32 %v1732_v32, %v1748_v52  ;;  %v1759_v57 = vmul.f32 1.442695, %v1755_v55 }
0x12c3   : > { %v1754_v41 = vpop.xlane.xlu1 %1753 }
0x12c4   : > { %v1758_v56 = vsub.f32 %v1740_v30, %v1754_v41  ;;  %v1761_v51 = vmul.f32 1.442695, %v1756_v43 }
0x12c5   : > { %v1751_v53 = vpop.xlane.xlu0 %1750 }
0x12c6   : > { %v1765_v54 = vmul.f32 1.442695, %v1758_v56  ;;  %v1757_v45 = vsub.f32 %v1737_v39, %v1751_v53  ;;  %v3806_v39 = vld [vmem:[%s4560_s1 + $0x28] sm:$0xff] }
0x12c7   : > { %v1792_v3 = vpop.permute.xlu1 %1791 }
0x12c8   : > { %3716 = vpow2.f32 %v1765_v54  ;;  %v1763_v58 = vmul.f32 1.442695, %v1757_v45 }
0x12c9   : > { %3718 = vpow2.f32 %v1761_v51 }
0x12ca   : > { %3720 = vpow2.f32 %v1763_v58 }
0x12cb   : > { %3722 = vpow2.f32 %v1759_v57 }
0x12d2   : > { %v3717_v59 = vpop.eup %3716 }
0x12d3   : > { %v3719_v60 = vpop.eup %3718  ;;  %v1776_v61 = vsel %vm373_vm0, %v3717_v59, 0.0 }
0x12d4   : > { %v3721_v62 = vpop.eup %3720  ;;  %1777 = vadd.xlane.f32.xlu1 %v1776_v61  ;;  %v1770_v1 = vsel %vm373_vm0, %v3719_v60, 0.0 }
0x12d5   : > { %v1773_v63 = vsel %vm373_vm0, %v3721_v62, 0.0  ;;  %v3723_v0 = vpop.eup %3722 }
0x12d6   : > { %1774 = vadd.xlane.f32.xlu0 %v1773_v63  ;;  %v1767_v2 = vsel %vm373_vm0, %v3723_v0, 0.0 }
0x12d8   : > { %1771 = vadd.xlane.f32.xlu1 %v1770_v1 }
0x12da   : > { %1768 = vadd.xlane.f32.xlu0 %v1767_v2 }
0x12e9   : > { %1854 = vrot.lane.b32.xlu1 %v4243_v22, %s3826_s20 }
0x12ed   : > { %1856 = vrot.lane.b32.xlu1 %v4241_v20, %s3826_s20 }
0x12f0   : > { %1789 = vrot.lane.b32.xlu0 %v4243_v22, %s3825_s18  ;;  %s4582_s18 = smov 24  }
0x12f1   : > { %1852 = vrot.lane.b32.xlu1 %v4241_v20, %s3827_s21 }
0x12f4   : > { %1850 = vrot.lane.b32.xlu0 %v4243_v22, %s3827_s21 }
0x1361   : > { %v1778_v4 = vpop.xlane.xlu1 %1777 }
0x1363   : > { %v1775_v5 = vpop.xlane.xlu0 %1774 }
0x1364   : > { %3724 = vrcp.f32 %v1775_v5 }
0x1365   : > { %v1772_v6 = vpop.xlane.xlu1 %1771 }
0x1366   : > { %3726 = vrcp.f32 %v1772_v6 }
0x1367   : > { %3728 = vrcp.f32 %v1778_v4  ;;  %v1769_v7 = vpop.xlane.xlu0 %1768 }
0x1368   : > { %3730 = vrcp.f32 %v1769_v7 }
0x1369   : > { %v1855_v12 = vpop.permute.xlu1 %1854 }
0x136a   : > { %v1865_v23 = vsel %vm496_vm1, %v1855_v12, 0 }
0x136b   : > { %v1790_v8 = vpop.permute.xlu0 %1789 }
0x136c   : > { %3395 = vmatprep.subr.bf16.mxu1 %v1790_v8 }
0x136d   : > { %3396 = vmatpush3.bf16.msra.mxu1 %v1790_v8  ;;  %v1857_v24 = vpop.permute.xlu1 %1856 }
0x136e   : > { %3397 = vmatprep.subr.bf16.mxu1 %v1792_v3  ;;  %v3725_v9 = vpop.eup %3724  ;;  %v1868_v25 = vsel %vm496_vm1, %v1857_v24, 0 }
0x136f   : > { %v1785_v14 = vmul.f32 %v3725_v9, %v3721_v62  ;;  %v1851_v21 = vpop.permute.xlu0 %1850 }
0x1370   : > { %v3727_v10 = vpop.eup %3726 }
0x1371   : > { %v3729_v11 = vpop.eup %3728  ;;  %3398 = vmatpush3.bf16.msra.mxu1 %v1792_v3  ;;  %v1784_v16 = vmul.f32 %v3727_v10, %v3719_v60  ;;  %v1853_v26 = vpop.permute.xlu1 %1852 }
0x1372   : > { %v3731_v13 = vpop.eup %3730  ;;  %3513 = vmatprep.subr.msk.bf16.mxu1 %vm496_vm1, %v1855_v12  ;;  %v1786_v17 = vmul.f32 %v3729_v11, %v3717_v59 }
0x1373   : > { %v1783_v15 = vmul.f32 %v3731_v13, %v3723_v0 }
0x1374   : > { %v1788_v19 = vpack.c.bf16 %v1786_v17, %v1785_v14 }
0x1375   : > { %v1787_v18 = vpack.c.bf16 %v1784_v16, %v1783_v15 }
0x1377   : > { %3399 = vmatprep.mubr.msk.bf16.mxu1 %vm373_vm0, %v1787_v18 }
0x1378   : > { %3400 = vmatmul.mubr.msk.bf16.vlgmr.msra.gmra.mrb[24].mxu1 %vm373_vm0, %v1788_v19 }
0x1379   : > { %3407 = vmatprep.mubr.msk.bf16.mxu1 %vm496_vm1, %v1851_v21 }
0x137a   : > { %3404 = vmatpush3.bf16.xpose.msra.mxu1 %v1865_v23 }
0x137b   : > { %3514 = vmatprep.subr.msk.bf16.mxu1 %vm496_vm1, %v1857_v24 }
0x1382   : > { %3406 = vmatpush3.bf16.xpose.msra.mxu1 %v1868_v25 }
0x1389   : > { %3408 = vmatmul.mubr.msk.bf16.vlgmr.msra.gmra.mrb[28].mxu1 %vm496_vm1, %v1853_v26 }
0x144b   : > { %v4297_v50 = vpop.f32.mrb[24].mxu1 }
0x144c   : > { %v4299_v27 = vpop.f32.mrb[25].mxu1 }
0x144d   : > { %v4301_v48 = vpop.f32.mrb[26].mxu1 }
0x144e   : > { %v4303_v28 = vpop.f32.mrb[27].mxu1 }
0x145c   : > { %v3409_v49 = vpop.f32.mrb[28].mxu1 }
0x145d   : > { %v1904_v47 = vpop.f32.mrb[29].mxu1  ;;  %v1913_v37 = vadd.f32 %v3805_v33, %v3409_v49 }
0x145e   : > { %v1905_v30 = vadd.f32 %v3804_v29, %v1904_v47  ;;  %v3410_v31 = vpop.f32.mrb[30].mxu1 }
0x145f   : > { %v1907_v32 = vpop.f32.mrb[31].mxu1  ;;  %v1916_v52 = vadd.f32 %v3807_v38, %v3410_v31  ;;  %v1925_v43 = vsel %vm373_vm0, %v1913_v37, -inf  ;;  %v3808_v38 = vld [vmem:[%s4560_s1 + $0x40] sm:$0xff] }
0x1460   : > { %v1908_v42 = vadd.f32 %v3806_v39, %v1907_v32  ;;  %v1919_v46 = vsel %vm373_vm0, %v1905_v30, -inf }
0x1461   : > { %1920 = vmax.xlane.f32.xlu0 %v1919_v46  ;;  %v1928_v41 = vsel %vm373_vm0, %v1916_v52, -inf }
0x1462   : > { %v1922_v36 = vsel %vm373_vm0, %v1908_v42, -inf }
0x1463   : > { %1923 = vmax.xlane.f32.xlu1 %v1922_v36 }
0x1465   : > { %1926 = vmax.xlane.f32.xlu0 %v1925_v43 }
0x1469   : > { %1929 = vmax.xlane.f32.xlu0 %v1928_v41 }
0x1474   : > { %1967 = vrot.lane.b32.xlu1 %v4241_v20, %s3828_s11 }
0x14ee   : > { %v1921_v55 = vpop.xlane.xlu0 %1920 }
0x14ef   : > { %v1931_v56 = vsub.f32 %v1905_v30, %v1921_v55  ;;  %v3809_v55 = vld [vmem:[%s4560_s1 + $0x50] sm:$0xff] }
0x14f0   : > { %v1924_v51 = vpop.xlane.xlu1 %1923 }
0x14f1   : > { %v1935_v45 = vmul.f32 1.442695, %v1931_v56  ;;  %v1932_v57 = vsub.f32 %v1908_v42, %v1924_v51  ;;  %v3810_v51 = vld [vmem:[%s4560_s1 + $0x48] sm:$0xff] }
0x14f2   : > { %v1927_v53 = vpop.xlane.xlu0 %1926 }
0x14f3   : > { %v1933_v54 = vsub.f32 %v1913_v37, %v1927_v53  ;;  %v1937_v61 = vmul.f32 1.442695, %v1932_v57  ;;  %v3811_v57 = vld [vmem:[%s4560_s1 + $0x58] sm:$0xff] }
0x14f4   : > { %v1968_v7 = vpop.permute.xlu1 %1967 }
0x14f5   : > { %v1939_v58 = vmul.f32 1.442695, %v1933_v54 }
0x14f6   : > { %v1930_v59 = vpop.xlane.xlu0 %1929 }
0x14f7   : > { %3732 = vpow2.f32 %v1939_v58  ;;  %v1934_v60 = vsub.f32 %v1916_v52, %v1930_v59 }
0x14f8   : > { %3734 = vpow2.f32 %v1935_v45 }
0x14f9   : > { %v1941_v62 = vmul.f32 1.442695, %v1934_v60 }
0x14fb   : > { %3736 = vpow2.f32 %v1941_v62 }
0x14fc   : > { %3738 = vpow2.f32 %v1937_v61 }
0x1501   : > { %v3733_v63 = vpop.eup %3732 }
0x1502   : > { %v1949_v0 = vsel %vm373_vm0, %v3733_v63, 0.0  ;;  %v3735_v1 = vpop.eup %3734 }
0x1503   : > { %1950 = vadd.xlane.f32.xlu0 %v1949_v0  ;;  %v1943_v3 = vsel %vm373_vm0, %v3735_v1, 0.0 }
0x1505   : > { %v3737_v2 = vpop.eup %3736 }
0x1506   : > { %v1952_v4 = vsel %vm373_vm0, %v3737_v2, 0.0  ;;  %v3739_v5 = vpop.eup %3738 }
0x1507   : > { %1944 = vadd.xlane.f32.xlu0 %v1943_v3  ;;  %1953 = vadd.xlane.f32.xlu1 %v1952_v4  ;;  %v1946_v6 = vsel %vm373_vm0, %v3739_v5, 0.0 }
0x150b   : > { %1947 = vadd.xlane.f32.xlu1 %v1946_v6 }
0x151c   : > { %2030 = vrot.lane.b32.xlu1 %v4243_v22, %s3829_s12 }
0x151d   : > { %1965 = vrot.lane.b32.xlu0 %v4243_v22, %s3828_s11  ;;  %s4580_s11 = smov 8  }
0x1520   : > { %2032 = vrot.lane.b32.xlu1 %v4241_v20, %s3829_s12  ;;  %s4581_s12 = smov 16  }
0x1521   : > { %2026 = vrot.lane.b32.xlu0 %v4243_v22, %s3830_s14 }
0x1524   : > { %2028 = vrot.lane.b32.xlu1 %v4241_v20, %s3830_s14 }
0x1590   : > { %v1951_v8 = vpop.xlane.xlu0 %1950 }
0x1594   : > { %v1954_v9 = vpop.xlane.xlu1 %1953  ;;  %v1945_v10 = vpop.xlane.xlu0 %1944 }
0x1595   : > { %3740 = vrcp.f32 %v1954_v9 }
0x1596   : > { %3742 = vrcp.f32 %v1945_v10 }
0x1597   : > { %3744 = vrcp.f32 %v1951_v8 }
0x1598   : > { %v1948_v11 = vpop.xlane.xlu1 %1947  ;;  %v1966_v12 = vpop.permute.xlu0 %1965 }
0x1599   : > { %3746 = vrcp.f32 %v1948_v11  ;;  %3411 = vmatprep.subr.bf16.mxu0 %v1966_v12 }
0x159a   : > { %3412 = vmatpush3.bf16.msra.mxu0 %v1966_v12 }
0x159b   : > { %3413 = vmatprep.subr.bf16.mxu0 %v1968_v7 }
0x159c   : > { %v2031_v13 = vpop.permute.xlu1 %2030  ;;  %v2027_v49 = vpop.permute.xlu0 %2026 }
0x159d   : > { %v2041_v26 = vsel %vm496_vm1, %v2031_v13, 0 }
0x159e   : > { %3414 = vmatpush3.bf16.msra.mxu0 %v1968_v7 }
0x159f   : > { %3515 = vmatprep.subr.msk.bf16.mxu0 %vm496_vm1, %v2031_v13  ;;  %v3741_v14 = vpop.eup %3740 }
0x15a0   : > { %v3743_v15 = vpop.eup %3742  ;;  %v1962_v18 = vmul.f32 %v3741_v14, %v3737_v2  ;;  %v2033_v47 = vpop.permute.xlu1 %2032 }
0x15a1   : > { %v3745_v16 = vpop.eup %3744  ;;  %v1959_v19 = vmul.f32 %v3743_v15, %v3735_v1  ;;  %v2044_v29 = vsel %vm496_vm1, %v2033_v47, 0 }
0x15a2   : > { %v1961_v23 = vmul.f32 %v3745_v16, %v3733_v63 }
0x15a3   : > { %v3747_v17 = vpop.eup %3746 }
0x15a4   : > { %v1960_v21 = vmul.f32 %v3747_v17, %v3739_v5  ;;  %v1964_v25 = vpack.c.bf16 %v1962_v18, %v1961_v23  ;;  %v2029_v30 = vpop.permute.xlu1 %2028 }
0x15a6   : > { %v1963_v24 = vpack.c.bf16 %v1960_v21, %v1959_v19 }
0x15a8   : > { %3415 = vmatprep.mubr.msk.bf16.mxu0 %vm373_vm0, %v1963_v24 }
0x15a9   : > { %3416 = vmatmul.mubr.msk.bf16.vlgmr.msra.gmra.mrb[32].mxu0 %vm373_vm0, %v1964_v25 }
0x15aa   : > { %3420 = vmatpush3.bf16.xpose.msra.mxu0 %v2041_v26  ;;  %3423 = vmatprep.mubr.msk.bf16.mxu0 %vm496_vm1, %v2027_v49 }
0x15ab   : > { %3516 = vmatprep.subr.msk.bf16.mxu0 %vm496_vm1, %v2033_v47 }
0x15b2   : > { %3422 = vmatpush3.bf16.xpose.msra.mxu0 %v2044_v29 }
0x15b9   : > { %3424 = vmatmul.mubr.msk.bf16.vlgmr.msra.gmra.mrb[36].mxu0 %vm496_vm1, %v2029_v30 }
0x167c   : > { %v4345_v31 = vpop.f32.mrb[32].mxu0 }
0x167d   : > { %v4347_v32 = vpop.f32.mrb[33].mxu0 }
0x167e   : > { %v4349_v33 = vpop.f32.mrb[34].mxu0 }
0x167f   : > { %v3581_v37 = vpack.i.bf16 %v4349_v33, %v4345_v31  ;;  %v4353_v39 = vpop.f32.mrb[35].mxu0 }
0x1680   : > { %v3576_v42 = vpack.i.bf16 %v4353_v39, %v4347_v32 }
0x168c   : > { %v3425_v46 = vpop.f32.mrb[36].mxu0 }
0x168d   : > { %v2080_v36 = vpop.f32.mrb[37].mxu0  ;;  %v2089_v56 = vadd.f32 %v3809_v55, %v3425_v46 }
0x168e   : > { %v2081_v52 = vadd.f32 %v3808_v38, %v2080_v36  ;;  %v3426_v43 = vpop.f32.mrb[38].mxu0 }
0x168f   : > { %v2083_v41 = vpop.f32.mrb[39].mxu0  ;;  %v2092_v58 = vadd.f32 %v3811_v57, %v3426_v43  ;;  %v2101_v59 = vsel %vm373_vm0, %v2089_v56, -inf }
0x1690   : > { %v2084_v53 = vadd.f32 %v3810_v51, %v2083_v41  ;;  %v2095_v54 = vsel %vm373_vm0, %v2081_v52, -inf }
0x1691   : > { %2096 = vmax.xlane.f32.xlu0 %v2095_v54  ;;  %v2104_v60 = vsel %vm373_vm0, %v2092_v58, -inf }
0x1692   : > { %v2098_v45 = vsel %vm373_vm0, %v2084_v53, -inf }
0x1693   : > { %2099 = vmax.xlane.f32.xlu1 %v2098_v45 }
0x1695   : > { %2102 = vmax.xlane.f32.xlu0 %v2101_v59 }
0x1699   : > { %2105 = vmax.xlane.f32.xlu0 %v2104_v60 }
0x16a4   : > { %2143 = vrot.lane.b32.xlu1 %v4241_v20, %s3831_s30 }
0x171e   : > { %v2097_v61 = vpop.xlane.xlu0 %2096 }
0x171f   : > { %v2107_v62 = vsub.f32 %v2081_v52, %v2097_v61 }
0x1720   : > { %v2100_v63 = vpop.xlane.xlu1 %2099 }
0x1721   : > { %v2111_v2 = vmul.f32 1.442695, %v2107_v62  ;;  %v2108_v3 = vsub.f32 %v2084_v53, %v2100_v63  ;;  %v3812_v63 = vld [vmem:[%s4560_s1 + $0x60] sm:$0xff] }
0x1722   : > { %v2103_v0 = vpop.xlane.xlu0 %2102 }
0x1723   : > { %v2109_v1 = vsub.f32 %v2089_v56, %v2103_v0  ;;  %v2113_v7 = vmul.f32 1.442695, %v2108_v3  ;;  %v3813_v3 = vld [vmem:[%s4560_s1 + $0x70] sm:$0xff] }
0x1724   : > { %v2144_v17 = vpop.permute.xlu1 %2143 }
0x1725   : > { %v2115_v4 = vmul.f32 1.442695, %v2109_v1 }
0x1726   : > { %v2106_v5 = vpop.xlane.xlu0 %2105 }
0x1727   : > { %3748 = vpow2.f32 %v2115_v4  ;;  %v2110_v6 = vsub.f32 %v2092_v58, %v2106_v5  ;;  %v3814_v5 = vld [vmem:[%s4560_s1 + $0x68] sm:$0xff] }
0x1728   : > { %3750 = vpow2.f32 %v2111_v2 }
0x1729   : > { %v2117_v8 = vmul.f32 1.442695, %v2110_v6 }
0x172b   : > { %3752 = vpow2.f32 %v2117_v8 }
0x172c   : > { %3754 = vpow2.f32 %v2113_v7 }
0x1731   : > { %v3749_v9 = vpop.eup %3748 }
0x1732   : > { %v2125_v10 = vsel %vm373_vm0, %v3749_v9, 0.0  ;;  %v3751_v11 = vpop.eup %3750 }
0x1733   : > { %2126 = vadd.xlane.f32.xlu0 %v2125_v10  ;;  %v2119_v13 = vsel %vm373_vm0, %v3751_v11, 0.0 }
0x1735   : > { %v3753_v12 = vpop.eup %3752 }
0x1736   : > { %v2128_v14 = vsel %vm373_vm0, %v3753_v12, 0.0  ;;  %v3755_v15 = vpop.eup %3754 }
0x1737   : > { %2120 = vadd.xlane.f32.xlu0 %v2119_v13  ;;  %2129 = vadd.xlane.f32.xlu1 %v2128_v14  ;;  %v2122_v16 = vsel %vm373_vm0, %v3755_v15, 0.0 }
0x173b   : > { %2123 = vadd.xlane.f32.xlu1 %v2122_v16 }
0x174c   : > { %2206 = vrot.lane.b32.xlu1 %v4243_v22, %s3832_s17 }
0x174d   : > { %2141 = vrot.lane.b32.xlu0 %v4243_v22, %s3831_s30 }
0x1750   : > { %2208 = vrot.lane.b32.xlu1 %v4241_v20, %s3832_s17 }
0x1751   : > { %2202 = vrot.lane.b32.xlu0 %v4243_v22, %s3833_s22 }
0x1754   : > { %2204 = vrot.lane.b32.xlu1 %v4241_v20, %s3833_s22  ;;  %s3838_s22 = smov 32  }
0x17c0   : > { %v2127_v18 = vpop.xlane.xlu0 %2126 }
0x17c4   : > { %v2130_v19 = vpop.xlane.xlu1 %2129  ;;  %v2121_v21 = vpop.xlane.xlu0 %2120 }
0x17c5   : > { %3756 = vrcp.f32 %v2130_v19 }
0x17c6   : > { %3758 = vrcp.f32 %v2121_v21 }
0x17c7   : > { %3760 = vrcp.f32 %v2127_v18 }
0x17c8   : > { %v2124_v23 = vpop.xlane.xlu1 %2123  ;;  %v2142_v24 = vpop.permute.xlu0 %2141 }
0x17c9   : > { %3762 = vrcp.f32 %v2124_v23  ;;  %3427 = vmatprep.subr.bf16.mxu1 %v2142_v24 }
0x17ca   : > { %3428 = vmatpush3.bf16.msra.mxu1 %v2142_v24 }
0x17cb   : > { %3429 = vmatprep.subr.bf16.mxu1 %v2144_v17 }
0x17cc   : > { %v2207_v25 = vpop.permute.xlu1 %2206  ;;  %v2203_v55 = vpop.permute.xlu0 %2202 }
0x17cd   : > { %v2217_v41 = vsel %vm496_vm1, %v2207_v25, 0 }
0x17ce   : > { %3430 = vmatpush3.bf16.msra.mxu1 %v2144_v17 }
0x17cf   : > { %3517 = vmatprep.subr.msk.bf16.mxu1 %vm496_vm1, %v2207_v25  ;;  %v3757_v26 = vpop.eup %3756 }
0x17d0   : > { %v3759_v49 = vpop.eup %3758  ;;  %v2138_v30 = vmul.f32 %v3757_v26, %v3753_v12  ;;  %v2209_v56 = vpop.permute.xlu1 %2208 }
0x17d1   : > { %v3761_v47 = vpop.eup %3760  ;;  %v2135_v46 = vmul.f32 %v3759_v49, %v3751_v11  ;;  %v2220_v51 = vsel %vm496_vm1, %v2209_v56, 0 }
0x17d2   : > { %v2137_v38 = vmul.f32 %v3761_v47, %v3749_v9  ;;  %v3815_v9 = vld [vmem:[%s4560_s1 + $0x78] sm:$0xff] }
0x17d3   : > { %v3763_v29 = vpop.eup %3762 }
0x17d4   : > { %v2136_v36 = vmul.f32 %v3763_v29, %v3755_v15  ;;  %v2140_v43 = vpack.c.bf16 %v2138_v30, %v2137_v38  ;;  %v2205_v53 = vpop.permute.xlu1 %2204 }
0x17d6   : > { %v2139_v52 = vpack.c.bf16 %v2136_v36, %v2135_v46 }
0x17d8   : > { %3431 = vmatprep.mubr.msk.bf16.mxu1 %vm373_vm0, %v2139_v52 }
0x17d9   : > { %3432 = vmatmul.mubr.msk.bf16.vlgmr.msra.gmra.mrb[32].mxu1 %vm373_vm0, %v2140_v43 }
0x17da   : > { %3436 = vmatpush3.bf16.xpose.msra.mxu1 %v2217_v41  ;;  %3439 = vmatprep.mubr.msk.bf16.mxu1 %vm496_vm1, %v2203_v55 }
0x17db   : > { %3518 = vmatprep.subr.msk.bf16.mxu1 %vm496_vm1, %v2209_v56 }
0x17e2   : > { %3438 = vmatpush3.bf16.xpose.msra.mxu1 %v2220_v51 }
0x17e9   : > { %3440 = vmatmul.mubr.msk.bf16.vlgmr.msra.gmra.mrb[36].mxu1 %vm496_vm1, %v2205_v53 }
0x18ac   : > { %v3433_v54 = vpop.f32.mrb[32].mxu1 }
0x18ad   : > { %v2187_v45 = vpop.f32.mrb[33].mxu1 }
0x18ae   : > { %v3434_v57 = vpop.f32.mrb[34].mxu1 }
0x18af   : > { %v3591_v58 = vpack.i.bf16 %v3434_v57, %v3433_v54  ;;  %v2190_v59 = vpop.f32.mrb[35].mxu1  ;;  %v3618_v57 = vld [vmem:[%s4564_s5 + $0x10] sm:$0xff]  }
0x18b0   : > { %v3586_v60 = vpack.i.bf16 %v2190_v59, %v2187_v45 }
0x18bc   : > { %v3441_v61 = vpop.f32.mrb[36].mxu1 }
0x18bd   : > { %v2256_v62 = vpop.f32.mrb[37].mxu1  ;;  %v2265_v4 = vadd.f32 %v3813_v3, %v3441_v61 }
0x18be   : > { %v2257_v0 = vadd.f32 %v3812_v63, %v2256_v62  ;;  %v3442_v1 = vpop.f32.mrb[38].mxu1 }
0x18bf   : > { %v2259_v2 = vpop.f32.mrb[39].mxu1  ;;  %v2268_v10 = vadd.f32 %v3815_v9, %v3442_v1  ;;  %v2277_v11 = vsel %vm373_vm0, %v2265_v4, -inf }
0x18c0   : > { %v2260_v6 = vadd.f32 %v3814_v5, %v2259_v2  ;;  %v2271_v7 = vsel %vm373_vm0, %v2257_v0, -inf }
0x18c1   : > { %2272 = vmax.xlane.f32.xlu0 %v2271_v7  ;;  %v2280_v12 = vsel %vm373_vm0, %v2268_v10, -inf }
0x18c2   : > { %v2274_v8 = vsel %vm373_vm0, %v2260_v6, -inf }
0x18c3   : > { %2275 = vmax.xlane.f32.xlu1 %v2274_v8 }
0x18c5   : > { %2278 = vmax.xlane.f32.xlu0 %v2277_v11 }
0x18c9   : > { %2281 = vmax.xlane.f32.xlu0 %v2280_v12 }
0x194e   : > { %v2273_v13 = vpop.xlane.xlu0 %2272 }
0x194f   : > { %v2283_v14 = vsub.f32 %v2257_v0, %v2273_v13 }
0x1950   : > { %v2276_v15 = vpop.xlane.xlu1 %2275 }
0x1951   : > { %v2287_v18 = vmul.f32 1.442695, %v2283_v14  ;;  %v2284_v19 = vsub.f32 %v2260_v6, %v2276_v15 }
0x1952   : > { %v2279_v16 = vpop.xlane.xlu0 %2278 }
0x1953   : > { %v2285_v17 = vsub.f32 %v2265_v4, %v2279_v16  ;;  %v2289_v25 = vmul.f32 1.442695, %v2284_v19 }
0x1955   : > { %v2291_v21 = vmul.f32 1.442695, %v2285_v17 }
0x1956   : > { %v2282_v23 = vpop.xlane.xlu0 %2281 }
0x1957   : > { %3764 = vpow2.f32 %v2291_v21  ;;  %v2286_v24 = vsub.f32 %v2268_v10, %v2282_v23 }
0x1958   : > { %3766 = vpow2.f32 %v2287_v18 }
0x1959   : > { %v2293_v26 = vmul.f32 1.442695, %v2286_v24 }
0x195b   : > { %3768 = vpow2.f32 %v2293_v26 }
0x195c   : > { %3770 = vpow2.f32 %v2289_v25 }
0x1961   : > { %v3765_v49 = vpop.eup %3764 }
0x1962   : > { %v2301_v47 = vsel %vm373_vm0, %v3765_v49, 0.0  ;;  %v3767_v29 = vpop.eup %3766 }
0x1963   : > { %2302 = vadd.xlane.f32.xlu0 %v2301_v47  ;;  %v2295_v46 = vsel %vm373_vm0, %v3767_v29, 0.0 }
0x1965   : > { %v3769_v30 = vpop.eup %3768 }
0x1966   : > { %v2304_v36 = vsel %vm373_vm0, %v3769_v30, 0.0  ;;  %v3771_v38 = vpop.eup %3770 }
0x1967   : > { %2296 = vadd.xlane.f32.xlu0 %v2295_v46  ;;  %2305 = vadd.xlane.f32.xlu1 %v2304_v36  ;;  %v2298_v52 = vsel %vm373_vm0, %v3771_v38, 0.0 }
0x196b   : > { %2299 = vadd.xlane.f32.xlu1 %v2298_v52 }
0x197c   : > { %2319 = vrot.lane.b32.xlu1 %v4241_v20, %s4579_s16 }
0x197d   : > { %2317 = vrot.lane.b32.xlu0 %v4243_v22, %s4579_s16 }
0x1980   : > { %3577 = vrot.lane.b32.xlu1 %v3576_v42, %s4580_s11 }
0x1981   : > { %3587 = vrot.lane.b32.xlu0 %v3586_v60, %s4581_s12 }
0x1984   : > { %3582 = vrot.lane.b32.xlu1 %v3581_v37, %s4580_s11 }
0x1988   : > { %3592 = vrot.lane.b32.xlu1 %v3591_v58, %s4581_s12  ;;  %v3619_v58 = vld [vmem:[%s4564_s5 + $0x18] sm:$0xff]  }
0x19f0   : > { %v2303_v43 = vpop.xlane.xlu0 %2302 }
0x19f4   : > { %v2306_v41 = vpop.xlane.xlu1 %2305  ;;  %v2297_v20 = vpop.xlane.xlu0 %2296 }
0x19f5   : > { %3772 = vrcp.f32 %v2306_v41 }
0x19f6   : > { %3774 = vrcp.f32 %v2297_v20 }
0x19f7   : > { %3776 = vrcp.f32 %v2303_v43 }
0x19f8   : > { %v2300_v22 = vpop.xlane.xlu1 %2299  ;;  %v2318_v55 = vpop.permute.xlu0 %2317 }
0x19f9   : > { %3778 = vrcp.f32 %v2300_v22  ;;  %3443 = vmatprep.subr.bf16.mxu0 %v2318_v55 }
0x19fa   : > { %3444 = vmatpush3.bf16.msra.mxu0 %v2318_v55 }
0x19fc   : > { %v2320_v32 = vpop.permute.xlu1 %2319  ;;  %v3588_v6 = vpop.permute.xlu0 %3587 }
0x19fd   : > { %3445 = vmatprep.subr.bf16.mxu0 %v2320_v32  ;;  %v3590_v11 = vunpack.i.h.bf16 %v3588_v6  ;;  %v3589_v12 = vunpack.i.l.bf16 %v3588_v6 }
0x19fe   : > { %3446 = vmatpush3.bf16.msra.mxu0 %v2320_v32 }
0x19ff   : > { %v3773_v39 = vpop.eup %3772  ;;  %3451 = vmatprep.subr.bf16.mxu0 %v3618_v57 }
0x1a00   : > { %v3775_v42 = vpop.eup %3774  ;;  %v2314_v37 = vmul.f32 %v3773_v39, %v3769_v30  ;;  %v3578_v1 = vpop.permute.xlu1 %3577 }
0x1a01   : > { %v3777_v31 = vpop.eup %3776  ;;  %v2311_v56 = vmul.f32 %v3775_v42, %v3767_v29  ;;  %v3580_v4 = vunpack.i.h.bf16 %v3578_v1  ;;  %v3579_v5 = vunpack.i.l.bf16 %v3578_v1 }
0x1a02   : > { %v2313_v53 = vmul.f32 %v3777_v31, %v3765_v49  ;;  %v3620_v31 = vld [vmem:[%s4565_s6 + $0x10] sm:$0xff]  }
0x1a03   : > { %v3779_v33 = vpop.eup %3778  ;;  %v2427_v13 = vsel %vm496_vm1, %v4303_v28, %v3580_v4  ;;  %v2426_v14 = vsel %vm496_vm1, %v4299_v27, %v3579_v5  ;;  %3459 = vmatprep.subr.bf16.mxu1 %v3620_v31  ;;  %v3133_v4 = vld [vmem:[%s4562_s3 + $0x1] ss:$0 sm:$0xff] }
0x1a04   : > { %v2312_v51 = vmul.f32 %v3779_v33, %v3771_v38  ;;  %v2316_v45 = vpack.c.bf16 %v2314_v37, %v2313_v53  ;;  %v3583_v2 = vpop.permute.xlu1 %3582  ;;  %v2430_v49 = vsel %vm1260_vm2, %v2426_v14, %v3589_v12  ;;  %3460 = vmatpush3.bf16.msra.mxu1 %v3620_v31  ;;  %v3621_v33 = vld [vmem:[%s4565_s6 + $0x18] sm:$0xff]   ;;  %v3622_v37 = vld [vmem:[%s4566_s7 + $0x20] sm:$0xff]  }
0x1a05   : > { %v3585_v7 = vunpack.i.h.bf16 %v3583_v2  ;;  %v3584_v8 = vunpack.i.l.bf16 %v3583_v2  ;;  %3461 = vmatprep.subr.bf16.mxu1 %v3621_v33 }
0x1a06   : > { %v2315_v54 = vpack.c.bf16 %v2312_v51, %v2311_v56  ;;  %v3623_v56 = vld [vmem:[%s4566_s7 + $0x28] sm:$0xff]  }
0x1a07   : > { %v2429_v16 = vsel %vm496_vm1, %v4301_v48, %v3585_v7  ;;  %v2428_v17 = vsel %vm496_vm1, %v4297_v50, %v3584_v8  ;;  %v2431_v48 = vsel %vm1260_vm2, %v2427_v13, %v3590_v11 }
0x1a08   : > { %3447 = vmatprep.mubr.msk.bf16.mxu0 %vm373_vm0, %v2315_v54  ;;  %v3593_v3 = vpop.permute.xlu1 %3592  ;;  %3462 = vmatpush3.bf16.msra.mxu1 %v3621_v33 }
0x1a09   : > { %3448 = vmatmul.mubr.msk.bf16.vlgmr.msra.gmra.mrb[40].mxu0 %vm373_vm0, %v2316_v45  ;;  %v3595_v9 = vunpack.i.h.bf16 %v3593_v3  ;;  %v3594_v10 = vunpack.i.l.bf16 %v3593_v3 }
0x1a0a   : > { %3452 = vmatpush3.bf16.msra.mxu0 %v3618_v57 }
0x1a0b   : > { %3453 = vmatprep.subr.bf16.mxu0 %v3619_v58  ;;  %v2432_v23 = vsel %vm1260_vm2, %v2428_v17, %v3594_v10  ;;  %v2433_v24 = vsel %vm1260_vm2, %v2429_v16, %v3595_v9  ;;  %v3624_v16 = vld [vmem:[%s4566_s7 + $0x30] sm:$0xff]   ;;  %v3625_v17 = vld [vmem:[%s4566_s7 + $0x38] sm:$0xff]  }
0x1a0e   : > { %3454 = vmatpush3.bf16.msra.mxu0 %v3619_v58 }
0x1a0f   : > { %3467 = vmatprep.subr.bf16.mxu0 %v3622_v37 }
0x1adc   : > { %v3449_v59 = vpop.f32.mrb[40].mxu0 }
0x1add   : > { %v2363_v60 = vpop.f32.mrb[41].mxu0 }
0x1ade   : > { %v3450_v61 = vpop.f32.mrb[42].mxu0 }
0x1adf   : > { %v3601_v62 = vpack.i.bf16 %v3450_v61, %v3449_v59  ;;  %v2366_v63 = vpop.f32.mrb[43].mxu0 }
0x1ae0   : > { %v3596_v0 = vpack.i.bf16 %v2366_v63, %v2363_v60 }
0x1ae1   : > { %3602 = vrot.lane.b32.xlu1 %v3601_v62, %s4582_s18 }
0x1ae2   : > { %3597 = vrot.lane.b32.xlu0 %v3596_v0, %s4582_s18 }
0x1b53   : > { %v3603_v15 = vpop.permute.xlu1 %3602 }
0x1b54   : > { %v3605_v18 = vunpack.i.h.bf16 %v3603_v15  ;;  %v3604_v19 = vunpack.i.l.bf16 %v3603_v15  ;;  %v3598_v21 = vpop.permute.xlu0 %3597 }
0x1b55   : > { %v3600_v25 = vunpack.i.h.bf16 %v3598_v21  ;;  %v3599_v26 = vunpack.i.l.bf16 %v3598_v21 }
0x1b56   : > { %v2437_v28 = vsel %vm1265_vm3, %v2433_v24, %v3605_v18  ;;  %v2436_v27 = vsel %vm1265_vm3, %v2432_v23, %v3604_v19 }
0x1b57   : > { %v2444_v47 = vpack.c.bf16 %v2437_v28, %v2436_v27  ;;  %v2434_v50 = vsel %vm1265_vm3, %v2430_v49, %v3599_v26  ;;  %v2435_v29 = vsel %vm1265_vm3, %v2431_v48, %v3600_v25 }
0x1b58   : > { %v2443_v30 = vpack.c.bf16 %v2435_v29, %v2434_v50 }
0x1b5a   : > { %3455 = vmatprep.mubr.msk.bf16.mxu0 %vm373_vm0, %v2443_v30 }
0x1b5b   : > { %3456 = vmatmul.mubr.msk.bf16.vlgmr.msra.gmra.mrb[44].mxu0 %vm373_vm0, %v2444_v47 }
0x1b5c   : > { %3468 = vmatpush3.bf16.msra.mxu0 %v3622_v37 }
0x1b5d   : > { %3469 = vmatprep.subr.bf16.mxu0 %v3623_v56 }
0x1b60   : > { %3470 = vmatpush3.bf16.msra.mxu0 %v3623_v56 }
0x1b61   : > { %3471 = vmatprep.subr.bf16.mxu0 %v3624_v16 }
0x1b64   : > { %3472 = vmatpush3.bf16.msra.mxu0 %v3624_v16 }
0x1b65   : > { %3473 = vmatprep.subr.bf16.mxu0 %v3625_v17 }
0x1b68   : > { %3474 = vmatpush3.bf16.msra.mxu0 %v3625_v17 }
0x1c2e   : > { %v3457_v46 = vpop.f32.mrb[44].mxu0 }
0x1c2f   : > { %v2497_v36 = vpop.f32.mrb[45].mxu0  ;;  %v4460_v38 = vadd.f32 %v3457_v46, %v4203_v34 }
0x1c30   : > { %v4463_v52 = vadd.f32 %v2497_v36, %v4206_v35  ;;  %v3458_v43 = vpop.f32.mrb[46].mxu0 }
0x1c31   : > { %v2500_v41 = vpop.f32.mrb[47].mxu0  ;;  %v4471_v55 = vadd.f32 %v3458_v43, %v4209_v40  ;;  %v2519_v35 = vmul.f32 %v4460_v38, %v4460_v38 }
0x1c32   : > { %v4466_v20 = vadd.f32 %v2500_v41, %v4212_v44  ;;  %v2517_v22 = vmul.f32 %v4463_v52, %v4463_v52 }
0x1c33   : > { %v2527_v44 = vsel %vm373_vm0, %v2519_v35, 0.0  ;;  %v2520_v42 = vmul.f32 %v4471_v55, %v4471_v55 }
0x1c34   : > { %v2521_v32 = vsel %vm373_vm0, %v2517_v22, 0.0  ;;  %v2518_v34 = vmul.f32 %v4466_v20, %v4466_v20 }
0x1c35   : > { %2522 = vadd.xlane.f32.xlu0 %v2521_v32  ;;  %v2530_v40 = vsel %vm373_vm0, %v2520_v42, 0.0 }
0x1c36   : > { %v2524_v39 = vsel %vm373_vm0, %v2518_v34, 0.0 }
0x1c37   : > { %2525 = vadd.xlane.f32.xlu1 %v2524_v39 }
0x1c39   : > { %2528 = vadd.xlane.f32.xlu0 %v2527_v44 }
0x1c3d   : > { %2531 = vadd.xlane.f32.xlu0 %v2530_v40 }
0x1cc2   : > { %v2523_v51 = vpop.xlane.xlu0 %2522 }
0x1cc3   : > { %v2533_v53 = vmul.f32 0.03125, %v2523_v51 }
0x1cc4   : > { %v2526_v54 = vpop.xlane.xlu1 %2525 }
0x1cc5   : > { %v2537_v45 = vadd.f32 1e-06, %v2533_v53  ;;  %v2534_v57 = vmul.f32 0.03125, %v2526_v54 }
0x1cc6   : > { %v2529_v58 = vpop.xlane.xlu0 %2528 }
0x1cc7   : > { %3780 = vrsqrt.f32 %v2537_v45  ;;  %v2538_v59 = vadd.f32 1e-06, %v2534_v57  ;;  %v2535_v60 = vmul.f32 0.03125, %v2529_v58 }
0x1cc9   : > { %3782 = vrsqrt.f32 %v2538_v59  ;;  %v2539_v61 = vadd.f32 1e-06, %v2535_v60 }
0x1cca   : > { %v2532_v62 = vpop.xlane.xlu0 %2531 }
0x1ccb   : > { %3784 = vrsqrt.f32 %v2539_v61  ;;  %v2536_v63 = vmul.f32 0.03125, %v2532_v62  ;;  %v3156_v61 = vld [vmem:[%s4567_s8] ss:$0 sm:$0xff] }
0x1ccd   : > { %v2540_v0 = vadd.f32 1e-06, %v2536_v63 }
0x1ccf   : > { %3786 = vrsqrt.f32 %v2540_v0 }
0x1cd1   : > { %v3781_v1 = vpop.eup %3780 }
0x1cd2   : > { %v2545_v2 = vmul.f32 %v3781_v1, %v4463_v52 }
0x1cd3   : > { %v3783_v3 = vpop.eup %3782 }
0x1cd4   : > { %v2546_v5 = vmul.f32 %v3783_v3, %v4466_v20  ;;  %v2553_v7 = vmul.f32 %v3133_v4, %v2545_v2 }
0x1cd5   : > { %v3785_v6 = vpop.eup %3784 }
0x1cd6   : > { %v2554_v8 = vmul.f32 %v3133_v4, %v2546_v5  ;;  %v2547_v9 = vmul.f32 %v3785_v6, %v4460_v38 }
0x1cd8   : > { %v2562_v10 = vpack.c.bf16 %v2554_v8, %v2553_v7  ;;  %v2555_v13 = vmul.f32 %v3133_v4, %v2547_v9 }
0x1cd9   : > { %v3787_v11 = vpop.eup %3786 }
0x1cda   : > { %v2548_v12 = vmul.f32 %v3787_v11, %v4471_v55  ;;  %3463 = vmatprep.mubr.msk.bf16.mxu1 %vm373_vm0, %v2562_v10 }
0x1cdc   : > { %v2556_v14 = vmul.f32 %v3133_v4, %v2548_v12 }
0x1cde   : > { %v2563_v15 = vpack.c.bf16 %v2556_v14, %v2555_v13 }
0x1ce0   : > { %3464 = vmatmul.mubr.msk.bf16.vlgmr.msra.gmra.mrb[40].mxu1 %vm373_vm0, %v2563_v15 }
0x1db3   : > { %v3465_v18 = vpop.f32.mrb[40].mxu1 }
0x1db4   : > { %v2616_v19 = vpop.f32.mrb[41].mxu1  ;;  %v2633_v23 = vmax.f32 %v3465_v18, 0.0 }
0x1db5   : > { %v3466_v21 = vpop.f32.mrb[42].mxu1  ;;  %v2631_v26 = vmax.f32 %v2616_v19, 0.0 }
0x1db6   : > { %v2634_v24 = vmax.f32 %v3466_v21, 0.0  ;;  %v2619_v25 = vpop.f32.mrb[43].mxu1 }
0x1db7   : > { %v2632_v28 = vmax.f32 %v2619_v25, 0.0 }
0x1db8   : > { %v2645_v27 = vpack.c.bf16 %v2634_v24, %v2633_v23 }
0x1db9   : > { %v2644_v49 = vpack.c.bf16 %v2632_v28, %v2631_v26 }
0x1dbb   : > { %3475 = vmatprep.mubr.msk.bf16.mxu0 %vm1499_vm4, %v2644_v49 }
0x1dbc   : > { %3476 = vmatmul.mubr.msk.bf16.vlgmr.msra.gmra.mrb[48].mxu0 %vm1499_vm4, %v2645_v27 }
0x1e8f   : > { %v3477_v48 = vpop.f32.mrb[48].mxu0 }
0x1e90   : > { %v2710_v47 = vpop.f32.mrb[49].mxu0  ;;  %v2727_v50 = vadd.f32 %v3477_v48, %v4460_v38 }
0x1e91   : > { %v2725_v29 = vadd.f32 %v2710_v47, %v4463_v52  ;;  %v3478_v30 = vpop.f32.mrb[50].mxu0 }
0x1e92   : > { %v2713_v46 = vpop.f32.mrb[51].mxu0  ;;  %v2728_v43 = vadd.f32 %v3478_v30, %v4471_v55  ;;  %v2732_v22 = vmul.f32 %v2727_v50, %v2727_v50  ;;  %v3626_v55 = vld [vmem:[%s4568_s9] sm:$0xff]  }
0x1e93   : > { %v2730_v36 = vmul.f32 %v2725_v29, %v2725_v29  ;;  %v2726_v41 = vadd.f32 %v2713_v46, %v4466_v20  ;;  %3479 = vmatprep.subr.bf16.mxu1 %v3626_v55  ;;  %v3627_v20 = vld [vmem:[%s4568_s9 + $0x8] sm:$0xff]  }
0x1e94   : > { %v2733_v35 = vmul.f32 %v2728_v43, %v2728_v43  ;;  %v2740_v38 = vsel %vm373_vm0, %v2732_v22, 0.0  ;;  %3480 = vmatpush3.bf16.msra.mxu1 %v3626_v55 }
0x1e95   : > { %v2731_v32 = vmul.f32 %v2726_v41, %v2726_v41  ;;  %v2734_v34 = vsel %vm373_vm0, %v2730_v36, 0.0  ;;  %3481 = vmatprep.subr.bf16.mxu1 %v3627_v20 }
0x1e96   : > { %2735 = vadd.xlane.f32.xlu0 %v2734_v34  ;;  %v2743_v52 = vsel %vm373_vm0, %v2733_v35, 0.0 }
0x1e97   : > { %v2737_v39 = vsel %vm373_vm0, %v2731_v32, 0.0 }
0x1e98   : > { %2738 = vadd.xlane.f32.xlu1 %v2737_v39  ;;  %3482 = vmatpush3.bf16.msra.mxu1 %v3627_v20 }
0x1e9a   : > { %2741 = vadd.xlane.f32.xlu0 %v2740_v38 }
0x1e9c   : > { %2744 = vadd.xlane.f32.xlu1 %v2743_v52 }
0x1f23   : > { %v2736_v44 = vpop.xlane.xlu0 %2735 }
0x1f24   : > { %v2746_v42 = vmul.f32 0.03125, %v2736_v44 }
0x1f25   : > { %v2739_v40 = vpop.xlane.xlu1 %2738 }
0x1f26   : > { %v2750_v31 = vadd.f32 1e-06, %v2746_v42  ;;  %v2747_v33 = vmul.f32 0.03125, %v2739_v40 }
0x1f27   : > { %v2742_v37 = vpop.xlane.xlu0 %2741 }
0x1f28   : > { %3788 = vrsqrt.f32 %v2750_v31  ;;  %v2751_v56 = vadd.f32 1e-06, %v2747_v33  ;;  %v2748_v51 = vmul.f32 0.03125, %v2742_v37 }
0x1f29   : > { %v2745_v53 = vpop.xlane.xlu1 %2744 }
0x1f2a   : > { %3790 = vrsqrt.f32 %v2751_v56  ;;  %v2752_v54 = vadd.f32 1e-06, %v2748_v51  ;;  %v2749_v45 = vmul.f32 0.03125, %v2745_v53 }
0x1f2c   : > { %3792 = vrsqrt.f32 %v2752_v54  ;;  %v2753_v57 = vadd.f32 1e-06, %v2749_v45 }
0x1f2e   : > { %3794 = vrsqrt.f32 %v2753_v57 }
0x1f32   : > { %v3789_v58 = vpop.eup %3788 }
0x1f33   : > { %v2758_v59 = vmul.f32 %v3789_v58, %v2725_v29 }
0x1f34   : > { %v3791_v60 = vpop.eup %3790 }
0x1f35   : > { %v2759_v62 = vmul.f32 %v3791_v60, %v2726_v41  ;;  %v2768_v1 = vmul.f32 %v3156_v61, %v2758_v59 }
0x1f36   : > { %v3793_v63 = vpop.eup %3792 }
0x1f37   : > { %v2760_v0 = vmul.f32 %v3793_v63, %v2727_v50  ;;  %v2769_v2 = vmul.f32 %v3156_v61, %v2759_v62 }
0x1f38   : > { %v3795_v3 = vpop.eup %3794 }
0x1f39   : > { %v2761_v4 = vmul.f32 %v3795_v3, %v2728_v43  ;;  %v2776_v5 = vpack.c.bf16 %v2769_v2, %v2768_v1  ;;  %v2770_v7 = vmul.f32 %v3156_v61, %v2760_v0 }
0x1f3b   : > { %3483 = vmatprep.mubr.msk.bf16.mxu1 %vm373_vm0, %v2776_v5  ;;  %3519 = vmatprep.subr.msk.bf16.mxu1 %vm373_vm0, %v2776_v5  ;;  %v2791_v6 = vsel %vm373_vm0, %v2776_v5, 0  ;;  %v2771_v8 = vmul.f32 %v3156_v61, %v2761_v4 }
0x1f3c   : > { %3521 = vmatprep.subr.msk.bf16.mxu0 %vm373_vm0, %v2776_v5 }
0x1f3d   : > { %3496 = vmatpush3.bf16.xpose.msra.mxu0 %v2791_v6  ;;  %v2777_v9 = vpack.c.bf16 %v2771_v8, %v2770_v7 }
0x1f3f   : > { %3484 = vmatmul.mubr.msk.bf16.vlgmr.msra.gmra.mrb[44].mxu1 %vm373_vm0, %v2777_v9  ;;  %3522 = vmatprep.subr.msk.bf16.mxu0 %vm373_vm0, %v2777_v9  ;;  %v2794_v10 = vsel %vm373_vm0, %v2777_v9, 0 }
0x1f40   : > { %3488 = vmatpush3.bf16.xpose.msra.mxu1 %v2791_v6 }
0x1f41   : > { %3520 = vmatprep.subr.msk.bf16.mxu1 %vm373_vm0, %v2777_v9 }
0x1f45   : > { %3498 = vmatpush3.bf16.xpose.msra.mxu0 %v2794_v10 }
0x1f48   : > { %3490 = vmatpush3.bf16.xpose.msra.mxu1 %v2794_v10 }
0x2012   : > { %v3485_v11 = vpop.f32.mrb[44].mxu1 }
0x2013   : > { %v2830_v12 = vpop.f32.mrb[45].mxu1 }
0x2014   : > { %v3486_v13 = vpop.f32.mrb[46].mxu1 }
0x2015   : > { %v2846_v14 = vpack.c.bf16 %v3486_v13, %v3485_v11  ;;  %v2833_v15 = vpop.f32.mrb[47].mxu1 }
0x2016   : > { %v2845_v16 = vpack.c.bf16 %v2833_v15, %v2830_v12 }
0x2017   : > { %2906 = vrot.lane.b32.xlu1 %v2846_v14, %s3824_s26 }
0x2018   : > { %2904 = vrot.lane.b32.xlu0 %v2845_v16, %s3824_s26  ;;  %3491 = vmatprep.mubr.msk.bf16.mxu1 %vm373_vm0, %v2845_v16  ;;  %s4583_s26 = sshll.u32 %s4585_s15, 3 }
0x2019   : > { %3492 = vmatmul.mubr.msk.bf16.vlgmr.msra.gmra.mrb[48].mxu1 %vm373_vm0, %v2846_v14  ;;  %s361_s28 = scalar_lea.vmem %s4569_s10, %s4583_s26 }
0x2089   : > { %v2907_v18 = vpop.permute.xlu1 %2906 }
0x208a   : > { %v2905_v17 = vpop.permute.xlu0 %2904 }
0x208b   : > { %3499 = vmatprep.mubr.msk.bf16.mxu0 %vm373_vm0, %v2905_v17 }
0x208c   : > { %3500 = vmatmul.mubr.msk.bf16.vlgmr.msra.gmra.mrb[52].mxu0 %vm373_vm0, %v2907_v18 }
0x20ec   : > { %v3493_v19 = vpop.f32.mrb[48].mxu1 }
0x20ed   : > { %v2887_v21 = vpop.f32.mrb[49].mxu1 }
0x20ee   : > { %v3494_v23 = vpop.f32.mrb[50].mxu1 }
0x20ef   : > { %v2890_v24 = vpop.f32.mrb[51].mxu1 }
0x215f   : > { %v3501_v25 = vpop.f32.mrb[52].mxu0 }
0x2160   : > { %2971 = vrot.lane.b32.xlu0 %v3501_v25, %s3838_s22  ;;  %v2948_v26 = vpop.f32.mrb[53].mxu0 }
0x2161   : > { %2967 = vrot.lane.b32.xlu1 %v2948_v26, %s3838_s22  ;;  %v3502_v28 = vpop.f32.mrb[54].mxu0 }
0x2162   : > { %v2951_v27 = vpop.f32.mrb[55].mxu0 }
0x2165   : > { %2969 = vrot.lane.b32.xlu1 %v2951_v27, %s3838_s22 }
0x2169   : > { %2973 = vrot.lane.b32.xlu1 %v3502_v28, %s3838_s22 }
0x21d2   : > { %v2972_v47 = vpop.permute.xlu0 %2971 }
0x21d3   : > { %v2968_v49 = vpop.permute.xlu1 %2967  ;;  %v2981_v30 = vsel %vm373_vm0, %v3493_v19, %v2972_v47 }
0x21d4   : > { %v2979_v48 = vsel %vm373_vm0, %v2887_v21, %v2968_v49  ;;  %2985 = vst.msk [vmem:[%s361_s28 + $0x10] sm:$0xff] %vm1499_vm4, %v2981_v30 }
0x21d5   : > { %2983 = vst.msk [vmem:[%s361_s28] sm:$0xff] %vm1499_vm4, %v2979_v48 }
0x21d7   : > { %v2970_v50 = vpop.permute.xlu1 %2969 }
0x21d8   : > { %v2980_v29 = vsel %vm373_vm0, %v2890_v24, %v2970_v50 }
0x21d9   : > { %2984 = vst.msk [vmem:[%s361_s28 + $0x8] sm:$0xff] %vm1499_vm4, %v2980_v29 }
0x21db   : > { %v2974_v46 = vpop.permute.xlu1 %2973 }
0x21dc   : > { %v2982_v36 = vsel %vm373_vm0, %v3494_v23, %v2974_v46 }
0x21dd   : > { %2986 = vst.msk [vmem:[%s361_s28 + $0x18] sm:$0xff] %vm1499_vm4, %v2982_v36 }
0x21de PF: > { %s20_s13 = sadd.s32 1, %s3822_s13  }
0x21df   : > { %p17_p4 = scmp.ge.s32.totalorder %s20_s13, 4  }
0x21e1   :  { %19 = sbr.rel (!%p17_p4) target bundleno = 1 (0x1), region = 97 }

</bundles_post_ra>
